<compile_context>
chip_gen: v6e
topology: v6e:2x2x1
jax: 0.10.0
libtpu: 0.0.40
codegen_flags: <defaults>
</compile_context>

<pallas_src>
import functools

import jax
import jax.numpy as jnp
import numpy as np
from jax.experimental import pallas as pl
from jax.experimental.pallas import tpu as pltpu


# ---------------------------------------------------------------------------
# Pallas kernel.
#   src_ref / tgt_ref : (S*Bp, H) time-major-flattened embeddings (batch padded to Bp)
#   wih_* / whh_*     : (H, 4H) fused LSTM weights, gate order i, f, g, o
#   b_*               : (1, 4H) combined bias (bias_ih + bias_hh)
#   wlin / blin       : (H, H), (1, H)
#   wproj / bproj     : (H, V_pad), (1, V_pad)   (V padded to multiple of 128)
#   out_ref           : (S_tgt*Bp, V_pad)
#   pre_e / pre_d     : VMEM scratch (S*Bp, 4H) batched input projections
#   hs                : VMEM scratch (S_tgt*Bp, H) collected decoder hidden states
# Sequence lengths are small and static -> recurrences fully unrolled.
# ---------------------------------------------------------------------------
def _translator_kernel(B, S_src, S_tgt,
                       src_ref, tgt_ref,
                       wih_e_ref, whh_e_ref, b_e_ref,
                       wih_d_ref, whh_d_ref, b_d_ref,
                       wlin_ref, blin_ref, wproj_ref, bproj_ref,
                       out_ref,
                       pre_e_ref, pre_d_ref, hs_ref):
    H = wlin_ref.shape[0]

    # Batched fused input projections (+ bias folded) for all timesteps, once per
    # LSTM, staged into VMEM scratch (lane-dense (S*Bp, 4H) results).
    pre_e_ref[...] = (jnp.dot(src_ref[...], wih_e_ref[...],
                              preferred_element_type=jnp.float32) + b_e_ref[...])
    pre_d_ref[...] = (jnp.dot(tgt_ref[...], wih_d_ref[...],
                              preferred_element_type=jnp.float32) + b_d_ref[...])

    def step(pre_ref, whh_ref, t, h, c):
        r = t * B                                   # static, 8-aligned (B = Bp = 8)
        # One fused (B,H)@(H,4H) matmul per serial step; gate split lands on XLU.
        gates = (pre_ref[pl.ds(r, B), :]
                 + jnp.dot(h, whh_ref[...], preferred_element_type=jnp.float32))
        gi = jax.nn.sigmoid(gates[:, 0:H])
        gf = jax.nn.sigmoid(gates[:, H:2 * H])
        gg = jnp.tanh(gates[:, 2 * H:3 * H])
        go = jax.nn.sigmoid(gates[:, 3 * H:4 * H])
        c = gf * c + gi * gg
        h = go * jnp.tanh(c)
        return h, c

    h = jnp.zeros((B, H), jnp.float32)
    c = jnp.zeros((B, H), jnp.float32)

    # Encoder: only the final (h, c) is carried forward.
    for t in range(S_src):
        h, c = step(pre_e_ref, whh_e_ref, t, h, c)

    # Decoder seeded with encoder state; hidden states go straight to scratch
    # (one aligned vst per step; nothing stays live across the unrolled loop).
    for t in range(S_tgt):
        h, c = step(pre_d_ref, whh_d_ref, t, h, c)
        hs_ref[pl.ds(t * B, B), :] = h

    # Output head hoisted out of the recurrence: two batched matmuls + one
    # lane-dense store of the whole (S_tgt*Bp, V_pad) slab.
    h_all = hs_ref[...]
    lin = jnp.tanh(jnp.dot(h_all, wlin_ref[...],
                           preferred_element_type=jnp.float32) + blin_ref[...])
    out_ref[...] = (jnp.dot(lin, wproj_ref[...],
                            preferred_element_type=jnp.float32) + bproj_ref[...])


# ---------------------------------------------------------------------------
# Wrapper: embedding gathers (pure gather -> XLA glue), layout plumbing, kernel.
# ---------------------------------------------------------------------------
def translator_forward(params, source, target):
    H = params["w_lin"].shape[0]
    B, S_src = source.shape
    _, S_tgt = target.shape
    V_tgt = params["w_proj"].shape[1]
    V_pad = ((V_tgt + 127) // 128) * 128
    B_pad = ((B + 7) // 8) * 8          # sublane-tile aligned batch (zero rows)

    # Embedding lookups.
    src_emb = jnp.take(params["src_emb"], source, axis=0).astype(jnp.float32)  # (B,S,H)
    tgt_emb = jnp.take(params["tgt_emb"], target, axis=0).astype(jnp.float32)

    # Pad batch to a multiple of 8, then time-major flatten:
    # rows are [t0_b0..t0_b7, t1_b0..t1_b7, ...] -> every per-step slice is 8-aligned.
    def pad_and_flatten(emb, S):
        emb = jnp.pad(emb, ((0, B_pad - B), (0, 0), (0, 0)))
        return emb.transpose(1, 0, 2).reshape(S * B_pad, H)

    src_x = pad_and_flatten(src_emb, S_src)
    tgt_x = pad_and_flatten(tgt_emb, S_tgt)

    # Lane-dense projection: pad V to a multiple of 128 (zeros -> sliced off below).
    w_proj_pad = jnp.pad(params["w_proj"], ((0, 0), (0, V_pad - V_tgt)))
    b_proj_pad = jnp.pad(params["b_proj"], ((0, 0), (0, V_pad - V_tgt)))

    kernel_inputs = (
        src_x, tgt_x,
        params["w_ih_enc"], params["w_hh_enc"], params["b_enc"],
        params["w_ih_dec"], params["w_hh_dec"], params["b_dec"],
        params["w_lin"], params["b_lin"],
        w_proj_pad, b_proj_pad,
    )

    vmem_spec = pl.BlockSpec(memory_space=pltpu.MemorySpace.VMEM)
    out_flat = pl.pallas_call(
        functools.partial(_translator_kernel, B_pad, S_src, S_tgt),
        out_shape=jax.ShapeDtypeStruct((S_tgt * B_pad, V_pad), jnp.float32),
        in_specs=[vmem_spec] * len(kernel_inputs),
        out_specs=vmem_spec,
        scratch_shapes=[
            pltpu.VMEM((S_src * B_pad, 4 * H), jnp.float32),   # encoder x@W_ih + b
            pltpu.VMEM((S_tgt * B_pad, 4 * H), jnp.float32),   # decoder x@W_ih + b
            pltpu.VMEM((S_tgt * B_pad, H), jnp.float32),       # decoder hidden states
        ],
    )(*kernel_inputs)

    # Un-pad (batch + vocab) and restore (B, S_tgt, V_tgt) layout.
    out = out_flat.reshape(S_tgt, B_pad, V_pad)[:, :B, :V_tgt].transpose(1, 0, 2)
    return out


# ---------------------------------------------------------------------------
# Deterministic parameter construction (mirrors the nn.Module __init__ shapes).
# ---------------------------------------------------------------------------
def make_params(key, source_vocab, target_vocab, hidden_dim):
    H = hidden_dim
    keys = jax.random.split(key, 12)

    def xavier_uniform(k, shape, gain):
        fan_in, fan_out = shape[1], shape[0]  # nn.Embedding weight is (vocab, H)
        bound = gain * np.sqrt(6.0 / (fan_in + fan_out))
        return jax.random.uniform(k, shape, jnp.float32, -bound, bound)

    def uniform(k, shape, bound):
        return jax.random.uniform(k, shape, jnp.float32, -bound, bound)

    tanh_gain = 5.0 / 3.0
    k_lstm = 1.0 / np.sqrt(H)

    params = {
        "src_emb": xavier_uniform(keys[0], (source_vocab, H), tanh_gain),
        "tgt_emb": xavier_uniform(keys[1], (target_vocab, H), tanh_gain),
        # LSTM weights stored transposed: (H, 4H), gate order i, f, g, o.
        "w_ih_enc": uniform(keys[2], (H, 4 * H), k_lstm),
        "w_hh_enc": uniform(keys[3], (H, 4 * H), k_lstm),
        "b_enc": uniform(keys[4], (1, 4 * H), k_lstm) + uniform(keys[5], (1, 4 * H), k_lstm),
        "w_ih_dec": uniform(keys[6], (H, 4 * H), k_lstm),
        "w_hh_dec": uniform(keys[7], (H, 4 * H), k_lstm),
        "b_dec": uniform(keys[8], (1, 4 * H), k_lstm) + uniform(keys[9], (1, 4 * H), k_lstm),
        # Linear layers stored transposed: (in, out).
        "w_lin": uniform(keys[10], (H, H), 1.0 / np.sqrt(H)),
        "b_lin": jnp.zeros((1, H), jnp.float32),
        "w_proj": uniform(keys[11], (H, target_vocab), 1.0 / np.sqrt(H)),
        "b_proj": jnp.zeros((1, target_vocab), jnp.float32),
    }
    return params


# ---------------------------------------------------------------------------
# Pure-JAX reference (same math) for a correctness cross-check.
# ---------------------------------------------------------------------------
def translator_reference(params, source, target):
    src_emb = jnp.take(params["src_emb"], source, axis=0)
    tgt_emb = jnp.take(params["tgt_emb"], target, axis=0)
    B, S_src, H = src_emb.shape
    S_tgt = tgt_emb.shape[1]

    def lstm_step(x_t, h, c, wih, whh, b):
        gates = x_t @ wih + h @ whh + b
        i = jax.nn.sigmoid(gates[:, 0:H])
        f = jax.nn.sigmoid(gates[:, H:2 * H])
        g = jnp.tanh(gates[:, 2 * H:3 * H])
        o = jax.nn.sigmoid(gates[:, 3 * H:4 * H])
        c = f * c + i * g
        h = o * jnp.tanh(c)
        return h, c

    h = jnp.zeros((B, H), jnp.float32)
    c = jnp.zeros((B, H), jnp.float32)
    for t in range(S_src):
        h, c = lstm_step(src_emb[:, t, :], h, c,
                         params["w_ih_enc"], params["w_hh_enc"], params["b_enc"])
    outs = []
    for t in range(S_tgt):
        h, c = lstm_step(tgt_emb[:, t, :], h, c,
                         params["w_ih_dec"], params["w_hh_dec"], params["b_dec"])
        lin = jnp.tanh(h @ params["w_lin"] + params["b_lin"])
        outs.append(lin @ params["w_proj"] + params["b_proj"])
    return jnp.stack(outs, axis=1)


if __name__ == "__main__":
    SOURCE_VOCAB = 13
    TARGET_VOCAB = 17
    HIDDEN_DIM = 32
    B, S_SRC, S_TGT = 2, 6, 8

    root = jax.random.PRNGKey(0)
    k_params, k_src, k_tgt = jax.random.split(root, 3)

    params = make_params(k_params, SOURCE_VOCAB, TARGET_VOCAB, HIDDEN_DIM)
    source = jax.random.randint(k_src, (B, S_SRC), 0, SOURCE_VOCAB, dtype=jnp.int32)
    target = jax.random.randint(k_tgt, (B, S_TGT), 0, TARGET_VOCAB, dtype=jnp.int32)

    fwd = jax.jit(functools.partial(translator_forward, params))
    out = fwd(source, target)
    out = jax.block_until_ready(out)

    ref = translator_reference(params, source, target)
    assert out.shape == (B, S_TGT, TARGET_VOCAB), out.shape
    np.testing.assert_allclose(np.asarray(out), np.asarray(ref), rtol=1e-4, atol=1e-4)

    print("KERNEL_OK")
</pallas_src>

<mosaic_0001>
module attributes {stable_mosaic.version = 11 : i64} {
  func.func @_translator_kernel(%arg0: memref<48x32xf32, #tpu.memory_space<vmem>>, %arg1: memref<64x32xf32, #tpu.memory_space<vmem>>, %arg2: memref<32x128xf32, #tpu.memory_space<vmem>>, %arg3: memref<32x128xf32, #tpu.memory_space<vmem>>, %arg4: memref<1x128xf32, #tpu.memory_space<vmem>>, %arg5: memref<32x128xf32, #tpu.memory_space<vmem>>, %arg6: memref<32x128xf32, #tpu.memory_space<vmem>>, %arg7: memref<1x128xf32, #tpu.memory_space<vmem>>, %arg8: memref<32x32xf32, #tpu.memory_space<vmem>>, %arg9: memref<1x32xf32, #tpu.memory_space<vmem>>, %arg10: memref<32x128xf32, #tpu.memory_space<vmem>>, %arg11: memref<1x128xf32, #tpu.memory_space<vmem>>, %arg12: memref<64x128xf32, #tpu.memory_space<vmem>>, %arg13: memref<48x128xf32, #tpu.memory_space<vmem>>, %arg14: memref<64x128xf32, #tpu.memory_space<vmem>>, %arg15: memref<64x32xf32, #tpu.memory_space<vmem>>) attributes {dimension_semantics = [], scalar_prefetch = 0 : i64, scratch_operands = 3 : i64, tpu.core_type = #tpu.core_type<tc>} {
    %c0 = arith.constant 0 : index
    %c0_0 = arith.constant 0 : index
    %0 = vector.load %arg0[%c0, %c0_0] : memref<48x32xf32, #tpu.memory_space<vmem>>, vector<48x32xf32>
    %c0_1 = arith.constant 0 : index
    %c0_2 = arith.constant 0 : index
    %1 = vector.load %arg2[%c0_1, %c0_2] : memref<32x128xf32, #tpu.memory_space<vmem>>, vector<32x128xf32>
    %cst = arith.constant dense<0.000000e+00> : vector<48x128xf32>
    %2 = tpu.matmul %0, %1, %cst {dimension_numbers = #tpu.dot_dimension_numbers<[1], [0], [0], [1], [0, 0, 1, 1], [], []>} : vector<48x32xf32>, vector<32x128xf32>, vector<48x128xf32> -> vector<48x128xf32>
    %c0_3 = arith.constant 0 : index
    %c0_4 = arith.constant 0 : index
    %3 = vector.load %arg4[%c0_3, %c0_4] : memref<1x128xf32, #tpu.memory_space<vmem>>, vector<1x128xf32>
    %4 = vector.broadcast %3 : vector<1x128xf32> to vector<48x128xf32>
    %5 = arith.addf %2, %4 : vector<48x128xf32>
    %c0_5 = arith.constant 0 : index
    %c0_6 = arith.constant 0 : index
    %6 = vector.load %arg13[%c0_5, %c0_6] : memref<48x128xf32, #tpu.memory_space<vmem>>, vector<48x128xf32>
    tpu.vector_store %arg13[%c0_5, %c0_6], %5 {strides = array<i32>} : memref<48x128xf32, #tpu.memory_space<vmem>>, vector<48x128xf32>,
    %c0_7 = arith.constant 0 : index
    %c0_8 = arith.constant 0 : index
    %7 = vector.load %arg1[%c0_7, %c0_8] : memref<64x32xf32, #tpu.memory_space<vmem>>, vector<64x32xf32>
    %c0_9 = arith.constant 0 : index
    %c0_10 = arith.constant 0 : index
    %8 = vector.load %arg5[%c0_9, %c0_10] : memref<32x128xf32, #tpu.memory_space<vmem>>, vector<32x128xf32>
    %cst_11 = arith.constant dense<0.000000e+00> : vector<64x128xf32>
    %9 = tpu.matmul %7, %8, %cst_11 {dimension_numbers = #tpu.dot_dimension_numbers<[1], [0], [0], [1], [0, 0, 1, 1], [], []>} : vector<64x32xf32>, vector<32x128xf32>, vector<64x128xf32> -> vector<64x128xf32>
    %c0_12 = arith.constant 0 : index
    %c0_13 = arith.constant 0 : index
    %10 = vector.load %arg7[%c0_12, %c0_13] : memref<1x128xf32, #tpu.memory_space<vmem>>, vector<1x128xf32>
    %11 = vector.broadcast %10 : vector<1x128xf32> to vector<64x128xf32>
    %12 = arith.addf %9, %11 : vector<64x128xf32>
    %c0_14 = arith.constant 0 : index
    %c0_15 = arith.constant 0 : index
    %13 = vector.load %arg14[%c0_14, %c0_15] : memref<64x128xf32, #tpu.memory_space<vmem>>, vector<64x128xf32>
    tpu.vector_store %arg14[%c0_14, %c0_15], %12 {strides = array<i32>} : memref<64x128xf32, #tpu.memory_space<vmem>>, vector<64x128xf32>,
    %cst_16 = arith.constant 0.000000e+00 : f32
    %14 = vector.broadcast %cst_16 : f32 to vector<8x32xf32>
    %cst_17 = arith.constant 0.000000e+00 : f32
    %15 = vector.broadcast %cst_17 : f32 to vector<8x32xf32>
    %c0_18 = arith.constant 0 : index
    %c0_19 = arith.constant 0 : index
    %16 = vector.load %arg13[%c0_18, %c0_19] : memref<48x128xf32, #tpu.memory_space<vmem>>, vector<8x128xf32>
    %c0_20 = arith.constant 0 : index
    %c0_21 = arith.constant 0 : index
    %17 = vector.load %arg3[%c0_20, %c0_21] : memref<32x128xf32, #tpu.memory_space<vmem>>, vector<32x128xf32>
    %cst_22 = arith.constant dense<0.000000e+00> : vector<8x128xf32>
    %18 = tpu.matmul %14, %17, %cst_22 {dimension_numbers = #tpu.dot_dimension_numbers<[1], [0], [0], [1], [0, 0, 1, 1], [], []>} : vector<8x32xf32>, vector<32x128xf32>, vector<8x128xf32> -> vector<8x128xf32>
    %19 = arith.addf %16, %18 : vector<8x128xf32>
    %20 = vector.extract_strided_slice %19 {offsets = [0, 0], sizes = [8, 32], strides = [1, 1]} : vector<8x128xf32> to vector<8x32xf32>
    %21 = arith.negf %20 : vector<8x32xf32>
    %22 = math.exp %21 : vector<8x32xf32>
    %cst_23 = arith.constant 1.000000e+00 : f32
    %23 = vector.broadcast %cst_23 : f32 to vector<8x32xf32>
    %24 = arith.addf %23, %22 : vector<8x32xf32>
    %25 = arith.divf %23, %24 : vector<8x32xf32>
    %26 = vector.extract_strided_slice %19 {offsets = [0, 32], sizes = [8, 32], strides = [1, 1]} : vector<8x128xf32> to vector<8x32xf32>
    %27 = arith.negf %26 : vector<8x32xf32>
    %28 = math.exp %27 : vector<8x32xf32>
    %cst_24 = arith.constant 1.000000e+00 : f32
    %29 = vector.broadcast %cst_24 : f32 to vector<8x32xf32>
    %30 = arith.addf %29, %28 : vector<8x32xf32>
    %31 = arith.divf %29, %30 : vector<8x32xf32>
    %32 = vector.extract_strided_slice %19 {offsets = [0, 64], sizes = [8, 32], strides = [1, 1]} : vector<8x128xf32> to vector<8x32xf32>
    %33 = math.tanh %32 : vector<8x32xf32>
    %34 = vector.extract_strided_slice %19 {offsets = [0, 96], sizes = [8, 32], strides = [1, 1]} : vector<8x128xf32> to vector<8x32xf32>
    %35 = arith.negf %34 : vector<8x32xf32>
    %36 = math.exp %35 : vector<8x32xf32>
    %cst_25 = arith.constant 1.000000e+00 : f32
    %37 = vector.broadcast %cst_25 : f32 to vector<8x32xf32>
    %38 = arith.addf %37, %36 : vector<8x32xf32>
    %39 = arith.divf %37, %38 : vector<8x32xf32>
    %40 = arith.mulf %31, %15 : vector<8x32xf32>
    %41 = arith.mulf %25, %33 : vector<8x32xf32>
    %42 = arith.addf %40, %41 : vector<8x32xf32>
    %43 = math.tanh %42 : vector<8x32xf32>
    %44 = arith.mulf %39, %43 : vector<8x32xf32>
    %c8 = arith.constant 8 : index
    %c0_26 = arith.constant 0 : index
    %45 = vector.load %arg13[%c8, %c0_26] : memref<48x128xf32, #tpu.memory_space<vmem>>, vector<8x128xf32>
    %c0_27 = arith.constant 0 : index
    %c0_28 = arith.constant 0 : index
    %46 = vector.load %arg3[%c0_27, %c0_28] : memref<32x128xf32, #tpu.memory_space<vmem>>, vector<32x128xf32>
    %cst_29 = arith.constant dense<0.000000e+00> : vector<8x128xf32>
    %47 = tpu.matmul %44, %46, %cst_29 {dimension_numbers = #tpu.dot_dimension_numbers<[1], [0], [0], [1], [0, 0, 1, 1], [], []>} : vector<8x32xf32>, vector<32x128xf32>, vector<8x128xf32> -> vector<8x128xf32>
    %48 = arith.addf %45, %47 : vector<8x128xf32>
    %49 = vector.extract_strided_slice %48 {offsets = [0, 0], sizes = [8, 32], strides = [1, 1]} : vector<8x128xf32> to vector<8x32xf32>
    %50 = arith.negf %49 : vector<8x32xf32>
    %51 = math.exp %50 : vector<8x32xf32>
    %cst_30 = arith.constant 1.000000e+00 : f32
    %52 = vector.broadcast %cst_30 : f32 to vector<8x32xf32>
    %53 = arith.addf %52, %51 : vector<8x32xf32>
    %54 = arith.divf %52, %53 : vector<8x32xf32>
    %55 = vector.extract_strided_slice %48 {offsets = [0, 32], sizes = [8, 32], strides = [1, 1]} : vector<8x128xf32> to vector<8x32xf32>
    %56 = arith.negf %55 : vector<8x32xf32>
    %57 = math.exp %56 : vector<8x32xf32>
    %cst_31 = arith.constant 1.000000e+00 : f32
    %58 = vector.broadcast %cst_31 : f32 to vector<8x32xf32>
    %59 = arith.addf %58, %57 : vector<8x32xf32>
    %60 = arith.divf %58, %59 : vector<8x32xf32>
    %61 = vector.extract_strided_slice %48 {offsets = [0, 64], sizes = [8, 32], strides = [1, 1]} : vector<8x128xf32> to vector<8x32xf32>
    %62 = math.tanh %61 : vector<8x32xf32>
    %63 = vector.extract_strided_slice %48 {offsets = [0, 96], sizes = [8, 32], strides = [1, 1]} : vector<8x128xf32> to vector<8x32xf32>
    %64 = arith.negf %63 : vector<8x32xf32>
    %65 = math.exp %64 : vector<8x32xf32>
    %cst_32 = arith.constant 1.000000e+00 : f32
    %66 = vector.broadcast %cst_32 : f32 to vector<8x32xf32>
    %67 = arith.addf %66, %65 : vector<8x32xf32>
    %68 = arith.divf %66, %67 : vector<8x32xf32>
    %69 = arith.mulf %60, %42 : vector<8x32xf32>
    %70 = arith.mulf %54, %62 : vector<8x32xf32>
    %71 = arith.addf %69, %70 : vector<8x32xf32>
    %72 = math.tanh %71 : vector<8x32xf32>
    %73 = arith.mulf %68, %72 : vector<8x32xf32>
    %c16 = arith.constant 16 : index
    %c0_33 = arith.constant 0 : index
    %74 = vector.load %arg13[%c16, %c0_33] : memref<48x128xf32, #tpu.memory_space<vmem>>, vector<8x128xf32>
    %c0_34 = arith.constant 0 : index
    %c0_35 = arith.constant 0 : index
    %75 = vector.load %arg3[%c0_34, %c0_35] : memref<32x128xf32, #tpu.memory_space<vmem>>, vector<32x128xf32>
    %cst_36 = arith.constant dense<0.000000e+00> : vector<8x128xf32>
    %76 = tpu.matmul %73, %75, %cst_36 {dimension_numbers = #tpu.dot_dimension_numbers<[1], [0], [0], [1], [0, 0, 1, 1], [], []>} : vector<8x32xf32>, vector<32x128xf32>, vector<8x128xf32> -> vector<8x128xf32>
    %77 = arith.addf %74, %76 : vector<8x128xf32>
    %78 = vector.extract_strided_slice %77 {offsets = [0, 0], sizes = [8, 32], strides = [1, 1]} : vector<8x128xf32> to vector<8x32xf32>
    %79 = arith.negf %78 : vector<8x32xf32>
    %80 = math.exp %79 : vector<8x32xf32>
    %cst_37 = arith.constant 1.000000e+00 : f32
    %81 = vector.broadcast %cst_37 : f32 to vector<8x32xf32>
    %82 = arith.addf %81, %80 : vector<8x32xf32>
    %83 = arith.divf %81, %82 : vector<8x32xf32>
    %84 = vector.extract_strided_slice %77 {offsets = [0, 32], sizes = [8, 32], strides = [1, 1]} : vector<8x128xf32> to vector<8x32xf32>
    %85 = arith.negf %84 : vector<8x32xf32>
    %86 = math.exp %85 : vector<8x32xf32>
    %cst_38 = arith.constant 1.000000e+00 : f32
    %87 = vector.broadcast %cst_38 : f32 to vector<8x32xf32>
    %88 = arith.addf %87, %86 : vector<8x32xf32>
    %89 = arith.divf %87, %88 : vector<8x32xf32>
    %90 = vector.extract_strided_slice %77 {offsets = [0, 64], sizes = [8, 32], strides = [1, 1]} : vector<8x128xf32> to vector<8x32xf32>
    %91 = math.tanh %90 : vector<8x32xf32>
    %92 = vector.extract_strided_slice %77 {offsets = [0, 96], sizes = [8, 32], strides = [1, 1]} : vector<8x128xf32> to vector<8x32xf32>
    %93 = arith.negf %92 : vector<8x32xf32>
    %94 = math.exp %93 : vector<8x32xf32>
    %cst_39 = arith.constant 1.000000e+00 : f32
    %95 = vector.broadcast %cst_39 : f32 to vector<8x32xf32>
    %96 = arith.addf %95, %94 : vector<8x32xf32>
    %97 = arith.divf %95, %96 : vector<8x32xf32>
    %98 = arith.mulf %89, %71 : vector<8x32xf32>
    %99 = arith.mulf %83, %91 : vector<8x32xf32>
    %100 = arith.addf %98, %99 : vector<8x32xf32>
    %101 = math.tanh %100 : vector<8x32xf32>
    %102 = arith.mulf %97, %101 : vector<8x32xf32>
    %c24 = arith.constant 24 : index
    %c0_40 = arith.constant 0 : index
    %103 = vector.load %arg13[%c24, %c0_40] : memref<48x128xf32, #tpu.memory_space<vmem>>, vector<8x128xf32>
    %c0_41 = arith.constant 0 : index
    %c0_42 = arith.constant 0 : index
    %104 = vector.load %arg3[%c0_41, %c0_42] : memref<32x128xf32, #tpu.memory_space<vmem>>, vector<32x128xf32>
    %cst_43 = arith.constant dense<0.000000e+00> : vector<8x128xf32>
    %105 = tpu.matmul %102, %104, %cst_43 {dimension_numbers = #tpu.dot_dimension_numbers<[1], [0], [0], [1], [0, 0, 1, 1], [], []>} : vector<8x32xf32>, vector<32x128xf32>, vector<8x128xf32> -> vector<8x128xf32>
    %106 = arith.addf %103, %105 : vector<8x128xf32>
    %107 = vector.extract_strided_slice %106 {offsets = [0, 0], sizes = [8, 32], strides = [1, 1]} : vector<8x128xf32> to vector<8x32xf32>
    %108 = arith.negf %107 : vector<8x32xf32>
    %109 = math.exp %108 : vector<8x32xf32>
    %cst_44 = arith.constant 1.000000e+00 : f32
    %110 = vector.broadcast %cst_44 : f32 to vector<8x32xf32>
    %111 = arith.addf %110, %109 : vector<8x32xf32>
    %112 = arith.divf %110, %111 : vector<8x32xf32>
    %113 = vector.extract_strided_slice %106 {offsets = [0, 32], sizes = [8, 32], strides = [1, 1]} : vector<8x128xf32> to vector<8x32xf32>
    %114 = arith.negf %113 : vector<8x32xf32>
    %115 = math.exp %114 : vector<8x32xf32>
    %cst_45 = arith.constant 1.000000e+00 : f32
    %116 = vector.broadcast %cst_45 : f32 to vector<8x32xf32>
    %117 = arith.addf %116, %115 : vector<8x32xf32>
    %118 = arith.divf %116, %117 : vector<8x32xf32>
    %119 = vector.extract_strided_slice %106 {offsets = [0, 64], sizes = [8, 32], strides = [1, 1]} : vector<8x128xf32> to vector<8x32xf32>
    %120 = math.tanh %119 : vector<8x32xf32>
    %121 = vector.extract_strided_slice %106 {offsets = [0, 96], sizes = [8, 32], strides = [1, 1]} : vector<8x128xf32> to vector<8x32xf32>
    %122 = arith.negf %121 : vector<8x32xf32>
    %123 = math.exp %122 : vector<8x32xf32>
    %cst_46 = arith.constant 1.000000e+00 : f32
    %124 = vector.broadcast %cst_46 : f32 to vector<8x32xf32>
    %125 = arith.addf %124, %123 : vector<8x32xf32>
    %126 = arith.divf %124, %125 : vector<8x32xf32>
    %127 = arith.mulf %118, %100 : vector<8x32xf32>
    %128 = arith.mulf %112, %120 : vector<8x32xf32>
    %129 = arith.addf %127, %128 : vector<8x32xf32>
    %130 = math.tanh %129 : vector<8x32xf32>
    %131 = arith.mulf %126, %130 : vector<8x32xf32>
    %c32 = arith.constant 32 : index
    %c0_47 = arith.constant 0 : index
    %132 = vector.load %arg13[%c32, %c0_47] : memref<48x128xf32, #tpu.memory_space<vmem>>, vector<8x128xf32>
    %c0_48 = arith.constant 0 : index
    %c0_49 = arith.constant 0 : index
    %133 = vector.load %arg3[%c0_48, %c0_49] : memref<32x128xf32, #tpu.memory_space<vmem>>, vector<32x128xf32>
    %cst_50 = arith.constant dense<0.000000e+00> : vector<8x128xf32>
    %134 = tpu.matmul %131, %133, %cst_50 {dimension_numbers = #tpu.dot_dimension_numbers<[1], [0], [0], [1], [0, 0, 1, 1], [], []>} : vector<8x32xf32>, vector<32x128xf32>, vector<8x128xf32> -> vector<8x128xf32>
    %135 = arith.addf %132, %134 : vector<8x128xf32>
    %136 = vector.extract_strided_slice %135 {offsets = [0, 0], sizes = [8, 32], strides = [1, 1]} : vector<8x128xf32> to vector<8x32xf32>
    %137 = arith.negf %136 : vector<8x32xf32>
    %138 = math.exp %137 : vector<8x32xf32>
    %cst_51 = arith.constant 1.000000e+00 : f32
    %139 = vector.broadcast %cst_51 : f32 to vector<8x32xf32>
    %140 = arith.addf %139, %138 : vector<8x32xf32>
    %141 = arith.divf %139, %140 : vector<8x32xf32>
    %142 = vector.extract_strided_slice %135 {offsets = [0, 32], sizes = [8, 32], strides = [1, 1]} : vector<8x128xf32> to vector<8x32xf32>
    %143 = arith.negf %142 : vector<8x32xf32>
    %144 = math.exp %143 : vector<8x32xf32>
    %cst_52 = arith.constant 1.000000e+00 : f32
    %145 = vector.broadcast %cst_52 : f32 to vector<8x32xf32>
    %146 = arith.addf %145, %144 : vector<8x32xf32>
    %147 = arith.divf %145, %146 : vector<8x32xf32>
    %148 = vector.extract_strided_slice %135 {offsets = [0, 64], sizes = [8, 32], strides = [1, 1]} : vector<8x128xf32> to vector<8x32xf32>
    %149 = math.tanh %148 : vector<8x32xf32>
    %150 = vector.extract_strided_slice %135 {offsets = [0, 96], sizes = [8, 32], strides = [1, 1]} : vector<8x128xf32> to vector<8x32xf32>
    %151 = arith.negf %150 : vector<8x32xf32>
    %152 = math.exp %151 : vector<8x32xf32>
    %cst_53 = arith.constant 1.000000e+00 : f32
    %153 = vector.broadcast %cst_53 : f32 to vector<8x32xf32>
    %154 = arith.addf %153, %152 : vector<8x32xf32>
    %155 = arith.divf %153, %154 : vector<8x32xf32>
    %156 = arith.mulf %147, %129 : vector<8x32xf32>
    %157 = arith.mulf %141, %149 : vector<8x32xf32>
    %158 = arith.addf %156, %157 : vector<8x32xf32>
    %159 = math.tanh %158 : vector<8x32xf32>
    %160 = arith.mulf %155, %159 : vector<8x32xf32>
    %c40 = arith.constant 40 : index
    %c0_54 = arith.constant 0 : index
    %161 = vector.load %arg13[%c40, %c0_54] : memref<48x128xf32, #tpu.memory_space<vmem>>, vector<8x128xf32>
    %c0_55 = arith.constant 0 : index
    %c0_56 = arith.constant 0 : index
    %162 = vector.load %arg3[%c0_55, %c0_56] : memref<32x128xf32, #tpu.memory_space<vmem>>, vector<32x128xf32>
    %cst_57 = arith.constant dense<0.000000e+00> : vector<8x128xf32>
    %163 = tpu.matmul %160, %162, %cst_57 {dimension_numbers = #tpu.dot_dimension_numbers<[1], [0], [0], [1], [0, 0, 1, 1], [], []>} : vector<8x32xf32>, vector<32x128xf32>, vector<8x128xf32> -> vector<8x128xf32>
    %164 = arith.addf %161, %163 : vector<8x128xf32>
    %165 = vector.extract_strided_slice %164 {offsets = [0, 0], sizes = [8, 32], strides = [1, 1]} : vector<8x128xf32> to vector<8x32xf32>
    %166 = arith.negf %165 : vector<8x32xf32>
    %167 = math.exp %166 : vector<8x32xf32>
    %cst_58 = arith.constant 1.000000e+00 : f32
    %168 = vector.broadcast %cst_58 : f32 to vector<8x32xf32>
    %169 = arith.addf %168, %167 : vector<8x32xf32>
    %170 = arith.divf %168, %169 : vector<8x32xf32>
    %171 = vector.extract_strided_slice %164 {offsets = [0, 32], sizes = [8, 32], strides = [1, 1]} : vector<8x128xf32> to vector<8x32xf32>
    %172 = arith.negf %171 : vector<8x32xf32>
    %173 = math.exp %172 : vector<8x32xf32>
    %cst_59 = arith.constant 1.000000e+00 : f32
    %174 = vector.broadcast %cst_59 : f32 to vector<8x32xf32>
    %175 = arith.addf %174, %173 : vector<8x32xf32>
    %176 = arith.divf %174, %175 : vector<8x32xf32>
    %177 = vector.extract_strided_slice %164 {offsets = [0, 64], sizes = [8, 32], strides = [1, 1]} : vector<8x128xf32> to vector<8x32xf32>
    %178 = math.tanh %177 : vector<8x32xf32>
    %179 = vector.extract_strided_slice %164 {offsets = [0, 96], sizes = [8, 32], strides = [1, 1]} : vector<8x128xf32> to vector<8x32xf32>
    %180 = arith.negf %179 : vector<8x32xf32>
    %181 = math.exp %180 : vector<8x32xf32>
    %cst_60 = arith.constant 1.000000e+00 : f32
    %182 = vector.broadcast %cst_60 : f32 to vector<8x32xf32>
    %183 = arith.addf %182, %181 : vector<8x32xf32>
    %184 = arith.divf %182, %183 : vector<8x32xf32>
    %185 = arith.mulf %176, %158 : vector<8x32xf32>
    %186 = arith.mulf %170, %178 : vector<8x32xf32>
    %187 = arith.addf %185, %186 : vector<8x32xf32>
    %188 = math.tanh %187 : vector<8x32xf32>
    %189 = arith.mulf %184, %188 : vector<8x32xf32>
    %c0_61 = arith.constant 0 : index
    %c0_62 = arith.constant 0 : index
    %190 = vector.load %arg14[%c0_61, %c0_62] : memref<64x128xf32, #tpu.memory_space<vmem>>, vector<8x128xf32>
    %c0_63 = arith.constant 0 : index
    %c0_64 = arith.constant 0 : index
    %191 = vector.load %arg6[%c0_63, %c0_64] : memref<32x128xf32, #tpu.memory_space<vmem>>, vector<32x128xf32>
    %cst_65 = arith.constant dense<0.000000e+00> : vector<8x128xf32>
    %192 = tpu.matmul %189, %191, %cst_65 {dimension_numbers = #tpu.dot_dimension_numbers<[1], [0], [0], [1], [0, 0, 1, 1], [], []>} : vector<8x32xf32>, vector<32x128xf32>, vector<8x128xf32> -> vector<8x128xf32>
    %193 = arith.addf %190, %192 : vector<8x128xf32>
    %194 = vector.extract_strided_slice %193 {offsets = [0, 0], sizes = [8, 32], strides = [1, 1]} : vector<8x128xf32> to vector<8x32xf32>
    %195 = arith.negf %194 : vector<8x32xf32>
    %196 = math.exp %195 : vector<8x32xf32>
    %cst_66 = arith.constant 1.000000e+00 : f32
    %197 = vector.broadcast %cst_66 : f32 to vector<8x32xf32>
    %198 = arith.addf %197, %196 : vector<8x32xf32>
    %199 = arith.divf %197, %198 : vector<8x32xf32>
    %200 = vector.extract_strided_slice %193 {offsets = [0, 32], sizes = [8, 32], strides = [1, 1]} : vector<8x128xf32> to vector<8x32xf32>
    %201 = arith.negf %200 : vector<8x32xf32>
    %202 = math.exp %201 : vector<8x32xf32>
    %cst_67 = arith.constant 1.000000e+00 : f32
    %203 = vector.broadcast %cst_67 : f32 to vector<8x32xf32>
    %204 = arith.addf %203, %202 : vector<8x32xf32>
    %205 = arith.divf %203, %204 : vector<8x32xf32>
    %206 = vector.extract_strided_slice %193 {offsets = [0, 64], sizes = [8, 32], strides = [1, 1]} : vector<8x128xf32> to vector<8x32xf32>
    %207 = math.tanh %206 : vector<8x32xf32>
    %208 = vector.extract_strided_slice %193 {offsets = [0, 96], sizes = [8, 32], strides = [1, 1]} : vector<8x128xf32> to vector<8x32xf32>
    %209 = arith.negf %208 : vector<8x32xf32>
    %210 = math.exp %209 : vector<8x32xf32>
    %cst_68 = arith.constant 1.000000e+00 : f32
    %211 = vector.broadcast %cst_68 : f32 to vector<8x32xf32>
    %212 = arith.addf %211, %210 : vector<8x32xf32>
    %213 = arith.divf %211, %212 : vector<8x32xf32>
    %214 = arith.mulf %205, %187 : vector<8x32xf32>
    %215 = arith.mulf %199, %207 : vector<8x32xf32>
    %216 = arith.addf %214, %215 : vector<8x32xf32>
    %217 = math.tanh %216 : vector<8x32xf32>
    %218 = arith.mulf %213, %217 : vector<8x32xf32>
    %c0_69 = arith.constant 0 : index
    %c0_70 = arith.constant 0 : index
    %219 = vector.load %arg15[%c0_69, %c0_70] : memref<64x32xf32, #tpu.memory_space<vmem>>, vector<8x32xf32>
    tpu.vector_store %arg15[%c0_69, %c0_70], %218 {strides = array<i32>} : memref<64x32xf32, #tpu.memory_space<vmem>>, vector<8x32xf32>,
    %c8_71 = arith.constant 8 : index
    %c0_72 = arith.constant 0 : index
    %220 = vector.load %arg14[%c8_71, %c0_72] : memref<64x128xf32, #tpu.memory_space<vmem>>, vector<8x128xf32>
    %c0_73 = arith.constant 0 : index
    %c0_74 = arith.constant 0 : index
    %221 = vector.load %arg6[%c0_73, %c0_74] : memref<32x128xf32, #tpu.memory_space<vmem>>, vector<32x128xf32>
    %cst_75 = arith.constant dense<0.000000e+00> : vector<8x128xf32>
    %222 = tpu.matmul %218, %221, %cst_75 {dimension_numbers = #tpu.dot_dimension_numbers<[1], [0], [0], [1], [0, 0, 1, 1], [], []>} : vector<8x32xf32>, vector<32x128xf32>, vector<8x128xf32> -> vector<8x128xf32>
    %223 = arith.addf %220, %222 : vector<8x128xf32>
    %224 = vector.extract_strided_slice %223 {offsets = [0, 0], sizes = [8, 32], strides = [1, 1]} : vector<8x128xf32> to vector<8x32xf32>
    %225 = arith.negf %224 : vector<8x32xf32>
    %226 = math.exp %225 : vector<8x32xf32>
    %cst_76 = arith.constant 1.000000e+00 : f32
    %227 = vector.broadcast %cst_76 : f32 to vector<8x32xf32>
    %228 = arith.addf %227, %226 : vector<8x32xf32>
    %229 = arith.divf %227, %228 : vector<8x32xf32>
    %230 = vector.extract_strided_slice %223 {offsets = [0, 32], sizes = [8, 32], strides = [1, 1]} : vector<8x128xf32> to vector<8x32xf32>
    %231 = arith.negf %230 : vector<8x32xf32>
    %232 = math.exp %231 : vector<8x32xf32>
    %cst_77 = arith.constant 1.000000e+00 : f32
    %233 = vector.broadcast %cst_77 : f32 to vector<8x32xf32>
    %234 = arith.addf %233, %232 : vector<8x32xf32>
    %235 = arith.divf %233, %234 : vector<8x32xf32>
    %236 = vector.extract_strided_slice %223 {offsets = [0, 64], sizes = [8, 32], strides = [1, 1]} : vector<8x128xf32> to vector<8x32xf32>
    %237 = math.tanh %236 : vector<8x32xf32>
    %238 = vector.extract_strided_slice %223 {offsets = [0, 96], sizes = [8, 32], strides = [1, 1]} : vector<8x128xf32> to vector<8x32xf32>
    %239 = arith.negf %238 : vector<8x32xf32>
    %240 = math.exp %239 : vector<8x32xf32>
    %cst_78 = arith.constant 1.000000e+00 : f32
    %241 = vector.broadcast %cst_78 : f32 to vector<8x32xf32>
    %242 = arith.addf %241, %240 : vector<8x32xf32>
    %243 = arith.divf %241, %242 : vector<8x32xf32>
    %244 = arith.mulf %235, %216 : vector<8x32xf32>
    %245 = arith.mulf %229, %237 : vector<8x32xf32>
    %246 = arith.addf %244, %245 : vector<8x32xf32>
    %247 = math.tanh %246 : vector<8x32xf32>
    %248 = arith.mulf %243, %247 : vector<8x32xf32>
    %c8_79 = arith.constant 8 : index
    %c0_80 = arith.constant 0 : index
    %249 = vector.load %arg15[%c8_79, %c0_80] : memref<64x32xf32, #tpu.memory_space<vmem>>, vector<8x32xf32>
    tpu.vector_store %arg15[%c8_79, %c0_80], %248 {strides = array<i32>} : memref<64x32xf32, #tpu.memory_space<vmem>>, vector<8x32xf32>,
    %c16_81 = arith.constant 16 : index
    %c0_82 = arith.constant 0 : index
    %250 = vector.load %arg14[%c16_81, %c0_82] : memref<64x128xf32, #tpu.memory_space<vmem>>, vector<8x128xf32>
    %c0_83 = arith.constant 0 : index
    %c0_84 = arith.constant 0 : index
    %251 = vector.load %arg6[%c0_83, %c0_84] : memref<32x128xf32, #tpu.memory_space<vmem>>, vector<32x128xf32>
    %cst_85 = arith.constant dense<0.000000e+00> : vector<8x128xf32>
    %252 = tpu.matmul %248, %251, %cst_85 {dimension_numbers = #tpu.dot_dimension_numbers<[1], [0], [0], [1], [0, 0, 1, 1], [], []>} : vector<8x32xf32>, vector<32x128xf32>, vector<8x128xf32> -> vector<8x128xf32>
    %253 = arith.addf %250, %252 : vector<8x128xf32>
    %254 = vector.extract_strided_slice %253 {offsets = [0, 0], sizes = [8, 32], strides = [1, 1]} : vector<8x128xf32> to vector<8x32xf32>
    %255 = arith.negf %254 : vector<8x32xf32>
    %256 = math.exp %255 : vector<8x32xf32>
    %cst_86 = arith.constant 1.000000e+00 : f32
    %257 = vector.broadcast %cst_86 : f32 to vector<8x32xf32>
    %258 = arith.addf %257, %256 : vector<8x32xf32>
    %259 = arith.divf %257, %258 : vector<8x32xf32>
    %260 = vector.extract_strided_slice %253 {offsets = [0, 32], sizes = [8, 32], strides = [1, 1]} : vector<8x128xf32> to vector<8x32xf32>
    %261 = arith.negf %260 : vector<8x32xf32>
    %262 = math.exp %261 : vector<8x32xf32>
    %cst_87 = arith.constant 1.000000e+00 : f32
    %263 = vector.broadcast %cst_87 : f32 to vector<8x32xf32>
    %264 = arith.addf %263, %262 : vector<8x32xf32>
    %265 = arith.divf %263, %264 : vector<8x32xf32>
    %266 = vector.extract_strided_slice %253 {offsets = [0, 64], sizes = [8, 32], strides = [1, 1]} : vector<8x128xf32> to vector<8x32xf32>
    %267 = math.tanh %266 : vector<8x32xf32>
    %268 = vector.extract_strided_slice %253 {offsets = [0, 96], sizes = [8, 32], strides = [1, 1]} : vector<8x128xf32> to vector<8x32xf32>
    %269 = arith.negf %268 : vector<8x32xf32>
    %270 = math.exp %269 : vector<8x32xf32>
    %cst_88 = arith.constant 1.000000e+00 : f32
    %271 = vector.broadcast %cst_88 : f32 to vector<8x32xf32>
    %272 = arith.addf %271, %270 : vector<8x32xf32>
    %273 = arith.divf %271, %272 : vector<8x32xf32>
    %274 = arith.mulf %265, %246 : vector<8x32xf32>
    %275 = arith.mulf %259, %267 : vector<8x32xf32>
    %276 = arith.addf %274, %275 : vector<8x32xf32>
    %277 = math.tanh %276 : vector<8x32xf32>
    %278 = arith.mulf %273, %277 : vector<8x32xf32>
    %c16_89 = arith.constant 16 : index
    %c0_90 = arith.constant 0 : index
    %279 = vector.load %arg15[%c16_89, %c0_90] : memref<64x32xf32, #tpu.memory_space<vmem>>, vector<8x32xf32>
    tpu.vector_store %arg15[%c16_89, %c0_90], %278 {strides = array<i32>} : memref<64x32xf32, #tpu.memory_space<vmem>>, vector<8x32xf32>,
    %c24_91 = arith.constant 24 : index
    %c0_92 = arith.constant 0 : index
    %280 = vector.load %arg14[%c24_91, %c0_92] : memref<64x128xf32, #tpu.memory_space<vmem>>, vector<8x128xf32>
    %c0_93 = arith.constant 0 : index
    %c0_94 = arith.constant 0 : index
    %281 = vector.load %arg6[%c0_93, %c0_94] : memref<32x128xf32, #tpu.memory_space<vmem>>, vector<32x128xf32>
    %cst_95 = arith.constant dense<0.000000e+00> : vector<8x128xf32>
    %282 = tpu.matmul %278, %281, %cst_95 {dimension_numbers = #tpu.dot_dimension_numbers<[1], [0], [0], [1], [0, 0, 1, 1], [], []>} : vector<8x32xf32>, vector<32x128xf32>, vector<8x128xf32> -> vector<8x128xf32>
    %283 = arith.addf %280, %282 : vector<8x128xf32>
    %284 = vector.extract_strided_slice %283 {offsets = [0, 0], sizes = [8, 32], strides = [1, 1]} : vector<8x128xf32> to vector<8x32xf32>
    %285 = arith.negf %284 : vector<8x32xf32>
    %286 = math.exp %285 : vector<8x32xf32>
    %cst_96 = arith.constant 1.000000e+00 : f32
    %287 = vector.broadcast %cst_96 : f32 to vector<8x32xf32>
    %288 = arith.addf %287, %286 : vector<8x32xf32>
    %289 = arith.divf %287, %288 : vector<8x32xf32>
    %290 = vector.extract_strided_slice %283 {offsets = [0, 32], sizes = [8, 32], strides = [1, 1]} : vector<8x128xf32> to vector<8x32xf32>
    %291 = arith.negf %290 : vector<8x32xf32>
    %292 = math.exp %291 : vector<8x32xf32>
    %cst_97 = arith.constant 1.000000e+00 : f32
    %293 = vector.broadcast %cst_97 : f32 to vector<8x32xf32>
    %294 = arith.addf %293, %292 : vector<8x32xf32>
    %295 = arith.divf %293, %294 : vector<8x32xf32>
    %296 = vector.extract_strided_slice %283 {offsets = [0, 64], sizes = [8, 32], strides = [1, 1]} : vector<8x128xf32> to vector<8x32xf32>
    %297 = math.tanh %296 : vector<8x32xf32>
    %298 = vector.extract_strided_slice %283 {offsets = [0, 96], sizes = [8, 32], strides = [1, 1]} : vector<8x128xf32> to vector<8x32xf32>
    %299 = arith.negf %298 : vector<8x32xf32>
    %300 = math.exp %299 : vector<8x32xf32>
    %cst_98 = arith.constant 1.000000e+00 : f32
    %301 = vector.broadcast %cst_98 : f32 to vector<8x32xf32>
    %302 = arith.addf %301, %300 : vector<8x32xf32>
    %303 = arith.divf %301, %302 : vector<8x32xf32>
    %304 = arith.mulf %295, %276 : vector<8x32xf32>
    %305 = arith.mulf %289, %297 : vector<8x32xf32>
    %306 = arith.addf %304, %305 : vector<8x32xf32>
    %307 = math.tanh %306 : vector<8x32xf32>
    %308 = arith.mulf %303, %307 : vector<8x32xf32>
    %c24_99 = arith.constant 24 : index
    %c0_100 = arith.constant 0 : index
    %309 = vector.load %arg15[%c24_99, %c0_100] : memref<64x32xf32, #tpu.memory_space<vmem>>, vector<8x32xf32>
    tpu.vector_store %arg15[%c24_99, %c0_100], %308 {strides = array<i32>} : memref<64x32xf32, #tpu.memory_space<vmem>>, vector<8x32xf32>,
    %c32_101 = arith.constant 32 : index
    %c0_102 = arith.constant 0 : index
    %310 = vector.load %arg14[%c32_101, %c0_102] : memref<64x128xf32, #tpu.memory_space<vmem>>, vector<8x128xf32>
    %c0_103 = arith.constant 0 : index
    %c0_104 = arith.constant 0 : index
    %311 = vector.load %arg6[%c0_103, %c0_104] : memref<32x128xf32, #tpu.memory_space<vmem>>, vector<32x128xf32>
    %cst_105 = arith.constant dense<0.000000e+00> : vector<8x128xf32>
    %312 = tpu.matmul %308, %311, %cst_105 {dimension_numbers = #tpu.dot_dimension_numbers<[1], [0], [0], [1], [0, 0, 1, 1], [], []>} : vector<8x32xf32>, vector<32x128xf32>, vector<8x128xf32> -> vector<8x128xf32>
    %313 = arith.addf %310, %312 : vector<8x128xf32>
    %314 = vector.extract_strided_slice %313 {offsets = [0, 0], sizes = [8, 32], strides = [1, 1]} : vector<8x128xf32> to vector<8x32xf32>
    %315 = arith.negf %314 : vector<8x32xf32>
    %316 = math.exp %315 : vector<8x32xf32>
    %cst_106 = arith.constant 1.000000e+00 : f32
    %317 = vector.broadcast %cst_106 : f32 to vector<8x32xf32>
    %318 = arith.addf %317, %316 : vector<8x32xf32>
    %319 = arith.divf %317, %318 : vector<8x32xf32>
    %320 = vector.extract_strided_slice %313 {offsets = [0, 32], sizes = [8, 32], strides = [1, 1]} : vector<8x128xf32> to vector<8x32xf32>
    %321 = arith.negf %320 : vector<8x32xf32>
    %322 = math.exp %321 : vector<8x32xf32>
    %cst_107 = arith.constant 1.000000e+00 : f32
    %323 = vector.broadcast %cst_107 : f32 to vector<8x32xf32>
    %324 = arith.addf %323, %322 : vector<8x32xf32>
    %325 = arith.divf %323, %324 : vector<8x32xf32>
    %326 = vector.extract_strided_slice %313 {offsets = [0, 64], sizes = [8, 32], strides = [1, 1]} : vector<8x128xf32> to vector<8x32xf32>
    %327 = math.tanh %326 : vector<8x32xf32>
    %328 = vector.extract_strided_slice %313 {offsets = [0, 96], sizes = [8, 32], strides = [1, 1]} : vector<8x128xf32> to vector<8x32xf32>
    %329 = arith.negf %328 : vector<8x32xf32>
    %330 = math.exp %329 : vector<8x32xf32>
    %cst_108 = arith.constant 1.000000e+00 : f32
    %331 = vector.broadcast %cst_108 : f32 to vector<8x32xf32>
    %332 = arith.addf %331, %330 : vector<8x32xf32>
    %333 = arith.divf %331, %332 : vector<8x32xf32>
    %334 = arith.mulf %325, %306 : vector<8x32xf32>
    %335 = arith.mulf %319, %327 : vector<8x32xf32>
    %336 = arith.addf %334, %335 : vector<8x32xf32>
    %337 = math.tanh %336 : vector<8x32xf32>
    %338 = arith.mulf %333, %337 : vector<8x32xf32>
    %c32_109 = arith.constant 32 : index
    %c0_110 = arith.constant 0 : index
    %339 = vector.load %arg15[%c32_109, %c0_110] : memref<64x32xf32, #tpu.memory_space<vmem>>, vector<8x32xf32>
    tpu.vector_store %arg15[%c32_109, %c0_110], %338 {strides = array<i32>} : memref<64x32xf32, #tpu.memory_space<vmem>>, vector<8x32xf32>,
    %c40_111 = arith.constant 40 : index
    %c0_112 = arith.constant 0 : index
    %340 = vector.load %arg14[%c40_111, %c0_112] : memref<64x128xf32, #tpu.memory_space<vmem>>, vector<8x128xf32>
    %c0_113 = arith.constant 0 : index
    %c0_114 = arith.constant 0 : index
    %341 = vector.load %arg6[%c0_113, %c0_114] : memref<32x128xf32, #tpu.memory_space<vmem>>, vector<32x128xf32>
    %cst_115 = arith.constant dense<0.000000e+00> : vector<8x128xf32>
    %342 = tpu.matmul %338, %341, %cst_115 {dimension_numbers = #tpu.dot_dimension_numbers<[1], [0], [0], [1], [0, 0, 1, 1], [], []>} : vector<8x32xf32>, vector<32x128xf32>, vector<8x128xf32> -> vector<8x128xf32>
    %343 = arith.addf %340, %342 : vector<8x128xf32>
    %344 = vector.extract_strided_slice %343 {offsets = [0, 0], sizes = [8, 32], strides = [1, 1]} : vector<8x128xf32> to vector<8x32xf32>
    %345 = arith.negf %344 : vector<8x32xf32>
    %346 = math.exp %345 : vector<8x32xf32>
    %cst_116 = arith.constant 1.000000e+00 : f32
    %347 = vector.broadcast %cst_116 : f32 to vector<8x32xf32>
    %348 = arith.addf %347, %346 : vector<8x32xf32>
    %349 = arith.divf %347, %348 : vector<8x32xf32>
    %350 = vector.extract_strided_slice %343 {offsets = [0, 32], sizes = [8, 32], strides = [1, 1]} : vector<8x128xf32> to vector<8x32xf32>
    %351 = arith.negf %350 : vector<8x32xf32>
    %352 = math.exp %351 : vector<8x32xf32>
    %cst_117 = arith.constant 1.000000e+00 : f32
    %353 = vector.broadcast %cst_117 : f32 to vector<8x32xf32>
    %354 = arith.addf %353, %352 : vector<8x32xf32>
    %355 = arith.divf %353, %354 : vector<8x32xf32>
    %356 = vector.extract_strided_slice %343 {offsets = [0, 64], sizes = [8, 32], strides = [1, 1]} : vector<8x128xf32> to vector<8x32xf32>
    %357 = math.tanh %356 : vector<8x32xf32>
    %358 = vector.extract_strided_slice %343 {offsets = [0, 96], sizes = [8, 32], strides = [1, 1]} : vector<8x128xf32> to vector<8x32xf32>
    %359 = arith.negf %358 : vector<8x32xf32>
    %360 = math.exp %359 : vector<8x32xf32>
    %cst_118 = arith.constant 1.000000e+00 : f32
    %361 = vector.broadcast %cst_118 : f32 to vector<8x32xf32>
    %362 = arith.addf %361, %360 : vector<8x32xf32>
    %363 = arith.divf %361, %362 : vector<8x32xf32>
    %364 = arith.mulf %355, %336 : vector<8x32xf32>
    %365 = arith.mulf %349, %357 : vector<8x32xf32>
    %366 = arith.addf %364, %365 : vector<8x32xf32>
    %367 = math.tanh %366 : vector<8x32xf32>
    %368 = arith.mulf %363, %367 : vector<8x32xf32>
    %c40_119 = arith.constant 40 : index
    %c0_120 = arith.constant 0 : index
    %369 = vector.load %arg15[%c40_119, %c0_120] : memref<64x32xf32, #tpu.memory_space<vmem>>, vector<8x32xf32>
    tpu.vector_store %arg15[%c40_119, %c0_120], %368 {strides = array<i32>} : memref<64x32xf32, #tpu.memory_space<vmem>>, vector<8x32xf32>,
    %c48 = arith.constant 48 : index
    %c0_121 = arith.constant 0 : index
    %370 = vector.load %arg14[%c48, %c0_121] : memref<64x128xf32, #tpu.memory_space<vmem>>, vector<8x128xf32>
    %c0_122 = arith.constant 0 : index
    %c0_123 = arith.constant 0 : index
    %371 = vector.load %arg6[%c0_122, %c0_123] : memref<32x128xf32, #tpu.memory_space<vmem>>, vector<32x128xf32>
    %cst_124 = arith.constant dense<0.000000e+00> : vector<8x128xf32>
    %372 = tpu.matmul %368, %371, %cst_124 {dimension_numbers = #tpu.dot_dimension_numbers<[1], [0], [0], [1], [0, 0, 1, 1], [], []>} : vector<8x32xf32>, vector<32x128xf32>, vector<8x128xf32> -> vector<8x128xf32>
    %373 = arith.addf %370, %372 : vector<8x128xf32>
    %374 = vector.extract_strided_slice %373 {offsets = [0, 0], sizes = [8, 32], strides = [1, 1]} : vector<8x128xf32> to vector<8x32xf32>
    %375 = arith.negf %374 : vector<8x32xf32>
    %376 = math.exp %375 : vector<8x32xf32>
    %cst_125 = arith.constant 1.000000e+00 : f32
    %377 = vector.broadcast %cst_125 : f32 to vector<8x32xf32>
    %378 = arith.addf %377, %376 : vector<8x32xf32>
    %379 = arith.divf %377, %378 : vector<8x32xf32>
    %380 = vector.extract_strided_slice %373 {offsets = [0, 32], sizes = [8, 32], strides = [1, 1]} : vector<8x128xf32> to vector<8x32xf32>
    %381 = arith.negf %380 : vector<8x32xf32>
    %382 = math.exp %381 : vector<8x32xf32>
    %cst_126 = arith.constant 1.000000e+00 : f32
    %383 = vector.broadcast %cst_126 : f32 to vector<8x32xf32>
    %384 = arith.addf %383, %382 : vector<8x32xf32>
    %385 = arith.divf %383, %384 : vector<8x32xf32>
    %386 = vector.extract_strided_slice %373 {offsets = [0, 64], sizes = [8, 32], strides = [1, 1]} : vector<8x128xf32> to vector<8x32xf32>
    %387 = math.tanh %386 : vector<8x32xf32>
    %388 = vector.extract_strided_slice %373 {offsets = [0, 96], sizes = [8, 32], strides = [1, 1]} : vector<8x128xf32> to vector<8x32xf32>
    %389 = arith.negf %388 : vector<8x32xf32>
    %390 = math.exp %389 : vector<8x32xf32>
    %cst_127 = arith.constant 1.000000e+00 : f32
    %391 = vector.broadcast %cst_127 : f32 to vector<8x32xf32>
    %392 = arith.addf %391, %390 : vector<8x32xf32>
    %393 = arith.divf %391, %392 : vector<8x32xf32>
    %394 = arith.mulf %385, %366 : vector<8x32xf32>
    %395 = arith.mulf %379, %387 : vector<8x32xf32>
    %396 = arith.addf %394, %395 : vector<8x32xf32>
    %397 = math.tanh %396 : vector<8x32xf32>
    %398 = arith.mulf %393, %397 : vector<8x32xf32>
    %c48_128 = arith.constant 48 : index
    %c0_129 = arith.constant 0 : index
    %399 = vector.load %arg15[%c48_128, %c0_129] : memref<64x32xf32, #tpu.memory_space<vmem>>, vector<8x32xf32>
    tpu.vector_store %arg15[%c48_128, %c0_129], %398 {strides = array<i32>} : memref<64x32xf32, #tpu.memory_space<vmem>>, vector<8x32xf32>,
    %c56 = arith.constant 56 : index
    %c0_130 = arith.constant 0 : index
    %400 = vector.load %arg14[%c56, %c0_130] : memref<64x128xf32, #tpu.memory_space<vmem>>, vector<8x128xf32>
    %c0_131 = arith.constant 0 : index
    %c0_132 = arith.constant 0 : index
    %401 = vector.load %arg6[%c0_131, %c0_132] : memref<32x128xf32, #tpu.memory_space<vmem>>, vector<32x128xf32>
    %cst_133 = arith.constant dense<0.000000e+00> : vector<8x128xf32>
    %402 = tpu.matmul %398, %401, %cst_133 {dimension_numbers = #tpu.dot_dimension_numbers<[1], [0], [0], [1], [0, 0, 1, 1], [], []>} : vector<8x32xf32>, vector<32x128xf32>, vector<8x128xf32> -> vector<8x128xf32>
    %403 = arith.addf %400, %402 : vector<8x128xf32>
    %404 = vector.extract_strided_slice %403 {offsets = [0, 0], sizes = [8, 32], strides = [1, 1]} : vector<8x128xf32> to vector<8x32xf32>
    %405 = arith.negf %404 : vector<8x32xf32>
    %406 = math.exp %405 : vector<8x32xf32>
    %cst_134 = arith.constant 1.000000e+00 : f32
    %407 = vector.broadcast %cst_134 : f32 to vector<8x32xf32>
    %408 = arith.addf %407, %406 : vector<8x32xf32>
    %409 = arith.divf %407, %408 : vector<8x32xf32>
    %410 = vector.extract_strided_slice %403 {offsets = [0, 32], sizes = [8, 32], strides = [1, 1]} : vector<8x128xf32> to vector<8x32xf32>
    %411 = arith.negf %410 : vector<8x32xf32>
    %412 = math.exp %411 : vector<8x32xf32>
    %cst_135 = arith.constant 1.000000e+00 : f32
    %413 = vector.broadcast %cst_135 : f32 to vector<8x32xf32>
    %414 = arith.addf %413, %412 : vector<8x32xf32>
    %415 = arith.divf %413, %414 : vector<8x32xf32>
    %416 = vector.extract_strided_slice %403 {offsets = [0, 64], sizes = [8, 32], strides = [1, 1]} : vector<8x128xf32> to vector<8x32xf32>
    %417 = math.tanh %416 : vector<8x32xf32>
    %418 = vector.extract_strided_slice %403 {offsets = [0, 96], sizes = [8, 32], strides = [1, 1]} : vector<8x128xf32> to vector<8x32xf32>
    %419 = arith.negf %418 : vector<8x32xf32>
    %420 = math.exp %419 : vector<8x32xf32>
    %cst_136 = arith.constant 1.000000e+00 : f32
    %421 = vector.broadcast %cst_136 : f32 to vector<8x32xf32>
    %422 = arith.addf %421, %420 : vector<8x32xf32>
    %423 = arith.divf %421, %422 : vector<8x32xf32>
    %424 = arith.mulf %415, %396 : vector<8x32xf32>
    %425 = arith.mulf %409, %417 : vector<8x32xf32>
    %426 = arith.addf %424, %425 : vector<8x32xf32>
    %427 = math.tanh %426 : vector<8x32xf32>
    %428 = arith.mulf %423, %427 : vector<8x32xf32>
    %c56_137 = arith.constant 56 : index
    %c0_138 = arith.constant 0 : index
    %429 = vector.load %arg15[%c56_137, %c0_138] : memref<64x32xf32, #tpu.memory_space<vmem>>, vector<8x32xf32>
    tpu.vector_store %arg15[%c56_137, %c0_138], %428 {strides = array<i32>} : memref<64x32xf32, #tpu.memory_space<vmem>>, vector<8x32xf32>,
    %c0_139 = arith.constant 0 : index
    %c0_140 = arith.constant 0 : index
    %430 = vector.load %arg15[%c0_139, %c0_140] : memref<64x32xf32, #tpu.memory_space<vmem>>, vector<64x32xf32>
    %c0_141 = arith.constant 0 : index
    %c0_142 = arith.constant 0 : index
    %431 = vector.load %arg8[%c0_141, %c0_142] : memref<32x32xf32, #tpu.memory_space<vmem>>, vector<32x32xf32>
    %cst_143 = arith.constant dense<0.000000e+00> : vector<64x32xf32>
    %432 = tpu.matmul %430, %431, %cst_143 {dimension_numbers = #tpu.dot_dimension_numbers<[1], [0], [0], [1], [0, 0, 1, 1], [], []>} : vector<64x32xf32>, vector<32x32xf32>, vector<64x32xf32> -> vector<64x32xf32>
    %c0_144 = arith.constant 0 : index
    %c0_145 = arith.constant 0 : index
    %433 = vector.load %arg9[%c0_144, %c0_145] : memref<1x32xf32, #tpu.memory_space<vmem>>, vector<1x32xf32>
    %434 = vector.broadcast %433 : vector<1x32xf32> to vector<64x32xf32>
    %435 = arith.addf %432, %434 : vector<64x32xf32>
    %436 = math.tanh %435 : vector<64x32xf32>
    %c0_146 = arith.constant 0 : index
    %c0_147 = arith.constant 0 : index
    %437 = vector.load %arg10[%c0_146, %c0_147] : memref<32x128xf32, #tpu.memory_space<vmem>>, vector<32x128xf32>
    %cst_148 = arith.constant dense<0.000000e+00> : vector<64x128xf32>
    %438 = tpu.matmul %436, %437, %cst_148 {dimension_numbers = #tpu.dot_dimension_numbers<[1], [0], [0], [1], [0, 0, 1, 1], [], []>} : vector<64x32xf32>, vector<32x128xf32>, vector<64x128xf32> -> vector<64x128xf32>
    %c0_149 = arith.constant 0 : index
    %c0_150 = arith.constant 0 : index
    %439 = vector.load %arg11[%c0_149, %c0_150] : memref<1x128xf32, #tpu.memory_space<vmem>>, vector<1x128xf32>
    %440 = vector.broadcast %439 : vector<1x128xf32> to vector<64x128xf32>
    %441 = arith.addf %438, %440 : vector<64x128xf32>
    %c0_151 = arith.constant 0 : index
    %c0_152 = arith.constant 0 : index
    %442 = vector.load %arg12[%c0_151, %c0_152] : memref<64x128xf32, #tpu.memory_space<vmem>>, vector<64x128xf32>
    tpu.vector_store %arg12[%c0_151, %c0_152], %441 {strides = array<i32>} : memref<64x128xf32, #tpu.memory_space<vmem>>, vector<64x128xf32>,
    return
  }
}

</mosaic_0001>

<bundles_post_ra>
// kernel: translator_forward.1
= control target key start
LH: loop header
LB: loop body
LE: loop exit
PB: predicated region body
PF: predicated region fallthrough
CT: control target
= control target key end

     0   :  { %vm58_vm0 = vcmask 261120   ;;  %v2649_v8 = vmov 0.0   ;;  %vm2650_vm1 = vmmov 0   ;;  %s2652_s30 = smov 32   ;;  %s3199_s2 = inlined_call_operand.vmem [shape: f32[32,128], index: 2, kind: input, shape index: {}]   ;;  %s3200_s0 = inlined_call_operand.vmem [shape: f32[48,32], index: 0, kind: input, shape index: {}]   ;;  %s3201_s3 = inlined_call_operand.vmem [shape: f32[32,128], index: 3, kind: input, shape index: {}]   ;;  %s3202_s4 = inlined_call_operand.vmem [shape: f32[1,128], index: 4, kind: input, shape index: {}]   ;;  %s3203_s5 = inlined_call_operand.vmem [shape: f32[32,128], index: 5, kind: input, shape index: {}]   ;;  %s3204_s1 = inlined_call_operand.vmem [shape: f32[64,32], index: 1, kind: input, shape index: {}]   ;;  %s3205_s7 = inlined_call_operand.vmem [shape: f32[1,128], index: 7, kind: input, shape index: {}]   ;;  %s3206_s6 = inlined_call_operand.vmem [shape: f32[32,128], index: 6, kind: input, shape index: {}]   ;;  %s3207_s8 = inlined_call_operand.vmem [shape: f32[32,32], index: 8, kind: input, shape index: {}]   ;;  %s3208_s10 = inlined_call_operand.vmem [shape: f32[32,128], index: 10, kind: input, shape index: {}]   ;;  %s3209_s9 = inlined_call_operand.vmem [shape: f32[1,32], index: 9, kind: input, shape index: {}]   ;;  %s3210_s11 = inlined_call_operand.vmem [shape: f32[1,128], index: 11, kind: input, shape index: {}]   ;;  %s3211_s12 = inlined_call_operand.vmem [shape: f32[64,128], index: 12, kind: output, shape index: {}]  }
   0x1   :  { %v50_v0 = vld [vmem:[%s3199_s2 + $0x18] sm:$0xff]  ;;  %v49_v1 = vld [vmem:[%s3199_s2 + $0x10] sm:$0xff]  ;;  %v41_v2 = vld [vmem:[%s3200_s0] sm:$0xff] }
   0x2   :  { %2286 = vmatprep.subr.mxu0 %v50_v0  ;;  %v48_v3 = vld [vmem:[%s3199_s2 + $0x8] sm:$0xff]  ;;  %2294 = vmatprep.mubr.msk.f32.mxu0 %vm58_vm0, %v41_v2  ;;  %v47_v4 = vld [vmem:[%s3199_s2] sm:$0xff]  ;;  %v2740_v6 = vld [vmem:[%s3201_s3 + $0x18] sm:$0xff] }
   0x3   :  { %2287 = vmatpush3.msra.mxu0 %v50_v0  ;;  %v42_v5 = vld [vmem:[%s3200_s0 + $0x8] sm:$0xff]  ;;  %v43_v7 = vld [vmem:[%s3200_s0 + $0x10] sm:$0xff]  ;;  %v44_v10 = vld [vmem:[%s3200_s0 + $0x18] sm:$0xff] }
   0x4   :  { %2288 = vmatprep.subr.mxu0 %v49_v1  ;;  %v2750_v9 = vld [vmem:[%s3201_s3 + $0x10] sm:$0xff]  ;;  %v45_v11 = vld [vmem:[%s3200_s0 + $0x20] sm:$0xff]  ;;  %v2764_v12 = vld [vmem:[%s3201_s3 + $0x8] sm:$0xff] }
   0x5   :  { %2289 = vmatpush3.msra.mxu0 %v49_v1  ;;  %v2772_v13 = vld [vmem:[%s3201_s3] sm:$0xff]  ;;  %v46_v14 = vld [vmem:[%s3200_s0 + $0x28] sm:$0xff]  ;;  %v189_v41 = vld [vmem:[%s3203_s5 + $0x18] sm:$0xff] }
   0x6   :  { %2290 = vmatprep.subr.mxu0 %v48_v3  ;;  %v2109_v15 = vld [vmem:[%s3202_s4] ss:$0 sm:$0xff]  ;;  %s2651_s4 = smov 64   ;;  %v188_v42 = vld [vmem:[%s3203_s5 + $0x10] sm:$0xff]  ;;  %2303 = vmatprep.subr.mxu1 %v189_v41  ;;  %v187_v44 = vld [vmem:[%s3203_s5 + $0x8] sm:$0xff] }
   0x7   :  { %2291 = vmatpush3.msra.mxu0 %v48_v3  ;;  %v178_v43 = vld [vmem:[%s3204_s1] sm:$0xff]  ;;  %2304 = vmatpush3.msra.mxu1 %v189_v41  ;;  %v179_v46 = vld [vmem:[%s3204_s1 + $0x8] sm:$0xff]  ;;  %v180_v47 = vld [vmem:[%s3204_s1 + $0x10] sm:$0xff] }
   0x8   :  { %2292 = vmatprep.subr.mxu0 %v47_v4  ;;  %2311 = vmatprep.mubr.msk.f32.mxu1 %vm58_vm0, %v178_v43  ;;  %v186_v45 = vld [vmem:[%s3203_s5] sm:$0xff]  ;;  %v181_v49 = vld [vmem:[%s3204_s1 + $0x18] sm:$0xff]  ;;  %v183_v51 = vld [vmem:[%s3204_s1 + $0x28] sm:$0xff] }
   0x9   :  { %2293 = vmatpush3.msra.mxu0 %v47_v4  ;;  %2305 = vmatprep.subr.mxu1 %v188_v42  ;;  %v182_v50 = vld [vmem:[%s3204_s1 + $0x20] sm:$0xff]  ;;  %v184_v52 = vld [vmem:[%s3204_s1 + $0x30] sm:$0xff]  ;;  %v185_v53 = vld [vmem:[%s3204_s1 + $0x38] sm:$0xff] }
   0xa   :  { %2295 = vmatmul.mubr.msk.f32.vlgmr.msra.gmra.mxu0 %vm58_vm0, %v42_v5  ;;  %2323 = vmatprep.subr.mxu0 %v2649_v8  ;;  %v2874_v56 = vld [vmem:[%s3205_s7] ss:$0 sm:$0xff] }
   0xb   :  { %2324 = vmatpush3.msra.mxu0 %v2740_v6  ;;  %2297 = vmatprep.mubr.msk.f32.mxu0 %vm58_vm0, %v43_v7 }
   0xc   :  { %2325 = vmatprep.subr.mxu0 %v2649_v8  ;;  %2306 = vmatpush3.msra.mxu1 %v188_v42 }
   0xd   :  { %2326 = vmatpush3.msra.mxu0 %v2750_v9  ;;  %2307 = vmatprep.subr.mxu1 %v187_v44 }
   0xe   :  { %2298 = vmatmul.mubr.msk.f32.gmra.mxu0 %vm58_vm0, %v44_v10  ;;  %2327 = vmatprep.subr.mxu0 %v2649_v8 }
   0xf   :  { %2300 = vmatprep.mubr.msk.f32.mxu0 %vm58_vm0, %v45_v11  ;;  %2328 = vmatpush3.msra.mxu0 %v2764_v12 }
  0x10   :  { %2329 = vmatprep.subr.mxu0 %v2649_v8  ;;  %2308 = vmatpush3.msra.mxu1 %v187_v44 }
  0x11   :  { %2330 = vmatpush3.msra.mxu0 %v2772_v13  ;;  %2309 = vmatprep.subr.mxu1 %v186_v45 }
  0x12   :  { %2301 = vmatmul.mubr.msk.f32.gmra.mxu0 %vm58_vm0, %v46_v14  ;;  %2345 = vmatprep.subr.mxu0 %v2649_v8 }
  0x13   :  { %2331 = vmatprep.mubr.msk.f32.mxu0 %vm2650_vm1, %v2649_v8  ;;  %2310 = vmatpush3.msra.mxu1 %v186_v45 }
  0x14   :  { %2312 = vmatmul.mubr.msk.f32.vlgmr.msra.gmra.mxu1 %vm58_vm0, %v179_v46  ;;  %2334 = vmatprep.subr.mxu1 %v2649_v8 }
  0x15   :  { %2335 = vmatpush3.msra.mxu1 %v2740_v6  ;;  %2314 = vmatprep.mubr.msk.f32.mxu1 %vm58_vm0, %v180_v47 }
  0x16   :  { %2332 = vmatmul.mubr.f32.vlgmr.msra.gmra.mxu0 %v2649_v8  ;;  %2336 = vmatprep.subr.mxu1 %v2649_v8 }
  0x17   :  { %2346 = vmatpush3.msra.mxu0 %v2740_v6  ;;  %2353 = vmatprep.mubr.msk.f32.mxu0 %vm2650_vm1, %v2649_v8 }
  0x18   :  { %2347 = vmatprep.subr.mxu0 %v2649_v8  ;;  %2337 = vmatpush3.msra.mxu1 %v2750_v9 }
  0x19   :  { %2348 = vmatpush3.msra.mxu0 %v2750_v9  ;;  %2315 = vmatmul.mubr.msk.f32.gmra.mxu1 %vm58_vm0, %v181_v49 }
  0x1a   :  { %2349 = vmatprep.subr.mxu0 %v2649_v8  ;;  %2338 = vmatprep.subr.mxu1 %v2649_v8 }
  0x1b   :  { %2350 = vmatpush3.msra.mxu0 %v2764_v12  ;;  %2317 = vmatprep.mubr.msk.f32.mxu1 %vm58_vm0, %v182_v50 }
  0x1c   :  { %2351 = vmatprep.subr.mxu0 %v2649_v8  ;;  %2339 = vmatpush3.msra.mxu1 %v2764_v12 }
  0x1d   :  { %2352 = vmatpush3.msra.mxu0 %v2772_v13  ;;  %2340 = vmatprep.subr.mxu1 %v2649_v8 }
  0x1e   :  { %2367 = vmatprep.subr.mxu0 %v2649_v8  ;;  %2341 = vmatpush3.msra.mxu1 %v2772_v13 }
  0x1f   :  { %2318 = vmatmul.mubr.msk.f32.gmra.mxu1 %vm58_vm0, %v183_v51  ;;  %2356 = vmatprep.subr.mxu1 %v2649_v8 }
  0x20   :  { %2320 = vmatprep.mubr.msk.f32.mxu1 %vm58_vm0, %v184_v52 }
  0x23   :  { %2321 = vmatmul.mubr.msk.f32.gmra.mxu1 %vm58_vm0, %v185_v53 }
  0x24   :  { %2342 = vmatprep.mubr.msk.f32.mxu1 %vm2650_vm1, %v2649_v8 }
  0xca   :  { %v2296_v16 = vpop.f32.mrf.mxu0 }
  0xcb   :  { %v2799_v17 = vadd.f32 %v2296_v16, %v2109_v15 }
  0xcc   :  { %v143_v18 = vpop.f32.mrf.mxu0 }
  0xcd   :  { %v144_v26 = vadd.f32 %v2109_v15, %v143_v18 }
  0xce   :  { %v2299_v19 = vpop.f32.mrf.mxu0 }
  0xcf   :  { %v2801_v20 = vadd.f32 %v2299_v19, %v2109_v15 }
  0xd0   :  { %v153_v21 = vpop.f32.mrf.mxu0 }
  0xd1   :  { %v2803_v22 = vadd.f32 %v2109_v15, %v153_v21 }
  0xd2   :  { %v2302_v23 = vpop.f32.mrf.mxu0 }
  0xd3   :  { %v2805_v24 = vadd.f32 %v2302_v23, %v2109_v15 }
  0xd4   :  { %v163_v25 = vpop.f32.mrf.mxu0  ;;  %v2313_v57 = vpop.f32.mrf.mxu1 }
  0xd5   :  { %v2807_v27 = vadd.f32 %v2109_v15, %v163_v25  ;;  %v2877_v58 = vadd.f32 %v2313_v57, %v2874_v56 }
  0xd6   :  { %v408_v28 = vpop.f32.mrf.mxu0  ;;  %v2879_v59 = vpop.f32.mrf.mxu1 }
  0xd7   :  { %v412_v29 = vadd.f32 %v408_v28, %v144_v26 }
  0xd8   :  { %v2333_v30 = vpop.f32.mrf.mxu0 }
  0xd9   :  { %2521 = vtanh.f32 %v412_v29  ;;  %v2125_v32 = vmul.f32 -1.442695, %v412_v29  ;;  %v2316_v60 = vpop.f32.mrf.mxu1 }
  0xda   :  { %v2882_v61 = vadd.f32 %v2316_v60, %v2874_v56 }
  0xdb   :  { %2523 = vpow2.f32 %v2125_v32  ;;  %v297_v62 = vpop.f32.mrf.mxu1 }
  0xdc   :  { %v2885_v63 = vadd.f32 %v2874_v56, %v297_v62 }
  0xdf   :  { %v2319_v0 = vpop.f32.mrf.mxu1 }
  0xe0   :  { %v2888_v1 = vadd.f32 %v2319_v0, %v2874_v56 }
  0xe1   :  { %v307_v2 = vpop.f32.mrf.mxu1 }
  0xe2   :  { %v2891_v3 = vadd.f32 %v2874_v56, %v307_v2 }
  0xe3   :  { %v2322_v4 = vpop.f32.mrf.mxu1 }
  0xe4   :  { %v2894_v5 = vadd.f32 %v2322_v4, %v2874_v56 }
  0xe5   :  { %v2907_v10 = vpop.f32.mrf.mxu1 }
  0xe6   :  { %v2522_v31 = vpop.eup %2521 }
  0xe7   :  { %422 = vrot.lane.b32.xlu0 %v2522_v31, %s2651_s4 }
  0xe8   :  { %v2524_v33 = vpop.eup %2523 }
  0xe9   :  { %v416_v34 = vadd.f32 1.0, %v2524_v33 }
  0xeb   :  { %2525 = vrcp.f32 %v416_v34 }
  0xf8   :  { %v2526_v35 = vpop.eup %2525 }
  0xf9   :  { %v420_v38 = vmul.f32 0.0, %v2526_v35 }
 0x159   :  { %v423_v36 = vpop.permute.xlu0 %422 }
 0x15a   :  { %v425_v37 = vmul.f32 %v2526_v35, %v423_v36 }
 0x15c   :  { %427 = vrot.lane.b32.xlu0 %v425_v37, %s2652_s30 }
 0x1ce   :  { %v428_v39 = vpop.permute.xlu0 %427 }
 0x1cf   :  { %v2811_v40 = vadd.f32 %v428_v39, %v420_v38 }
 0x1d1   :  { %2527 = vtanh.f32 %v2811_v40 }
 0x1de   :  { %v2528_v48 = vpop.eup %2527 }
 0x1df   :  { %433 = vrot.lane.b32.xlu1 %v2528_v48, %s2651_s4 }
 0x251   :  { %v434_v54 = vpop.permute.xlu1 %433 }
 0x252   :  { %v436_v55 = vmul.f32 %v2526_v35, %v434_v54 }
 0x254   :  { %439 = vrot.lane.b32.xlu1 %v436_v55, %s2652_s30 }
 0x2c6   :  { %v440_v7 = vpop.permute.xlu1 %439 }
 0x2c7   :  { %2343 = vmatmul.mubr.msk.f32.vlgmr.msra.gmra.mxu1 %vm58_vm0, %v440_v7 }
 0x2c8   :  { %2357 = vmatpush3.msra.mxu1 %v2740_v6  ;;  %2364 = vmatprep.mubr.msk.f32.mxu1 %vm2650_vm1, %v2649_v8 }
 0x2c9   :  { %2358 = vmatprep.subr.mxu1 %v2649_v8 }
 0x2ca   :  { %2359 = vmatpush3.msra.mxu1 %v2750_v9 }
 0x2cb   :  { %2360 = vmatprep.subr.mxu1 %v2649_v8 }
 0x2cc   :  { %2361 = vmatpush3.msra.mxu1 %v2764_v12 }
 0x2cd   :  { %2362 = vmatprep.subr.mxu1 %v2649_v8 }
 0x2ce   :  { %2363 = vmatpush3.msra.mxu1 %v2772_v13 }
 0x2cf   :  { %2378 = vmatprep.subr.mxu1 %v2649_v8 }
 0x387   :  { %v509_v11 = vpop.f32.mrf.mxu1 }
 0x388   :  { %v513_v14 = vadd.f32 %v509_v11, %v2799_v17 }
 0x389   :  { %v2344_v15 = vpop.f32.mrf.mxu1 }
 0x38a   :  { %2529 = vtanh.f32 %v513_v14  ;;  %v2127_v18 = vmul.f32 -1.442695, %v513_v14 }
 0x38c   :  { %2531 = vpow2.f32 %v2127_v18 }
 0x397   :  { %v2530_v16 = vpop.eup %2529 }
 0x398   :  { %523 = vrot.lane.b32.xlu0 %v2530_v16, %s2651_s4 }
 0x399   :  { %v2532_v19 = vpop.eup %2531 }
 0x39a   :  { %v517_v21 = vadd.f32 1.0, %v2532_v19 }
 0x39c   :  { %2533 = vrcp.f32 %v517_v21 }
 0x3a9   :  { %v2534_v23 = vpop.eup %2533 }
 0x3aa   :  { %v521_v28 = vmul.f32 %v2534_v23, %v2811_v40 }
 0x40a   :  { %v524_v25 = vpop.permute.xlu0 %523 }
 0x40b   :  { %v526_v26 = vmul.f32 %v2534_v23, %v524_v25 }
 0x40d   :  { %528 = vrot.lane.b32.xlu1 %v526_v26, %s2652_s30 }
 0x47f   :  { %v529_v29 = vpop.permute.xlu1 %528 }
 0x480   :  { %v531_v30 = vadd.f32 %v529_v29, %v521_v28 }
 0x482   :  { %2535 = vtanh.f32 %v531_v30 }
 0x48f   :  { %v2536_v17 = vpop.eup %2535 }
 0x490   :  { %534 = vrot.lane.b32.xlu0 %v2536_v17, %s2651_s4 }
 0x502   :  { %v535_v31 = vpop.permute.xlu0 %534 }
 0x503   :  { %v537_v32 = vmul.f32 %v2534_v23, %v535_v31 }
 0x505   :  { %540 = vrot.lane.b32.xlu1 %v537_v32, %s2652_s30 }
 0x577   :  { %v541_v33 = vpop.permute.xlu1 %540 }
 0x578   :  { %2354 = vmatmul.mubr.msk.f32.vlgmr.msra.gmra.mxu0 %vm58_vm0, %v541_v33 }
 0x579   :  { %2368 = vmatpush3.msra.mxu0 %v2740_v6  ;;  %2375 = vmatprep.mubr.msk.f32.mxu0 %vm2650_vm1, %v2649_v8 }
 0x57a   :  { %2369 = vmatprep.subr.mxu0 %v2649_v8 }
 0x57b   :  { %2370 = vmatpush3.msra.mxu0 %v2750_v9 }
 0x57c   :  { %2371 = vmatprep.subr.mxu0 %v2649_v8 }
 0x57d   :  { %2372 = vmatpush3.msra.mxu0 %v2764_v12 }
 0x57e   :  { %2373 = vmatprep.subr.mxu0 %v2649_v8 }
 0x57f   :  { %2374 = vmatpush3.msra.mxu0 %v2772_v13 }
 0x580   :  { %2389 = vmatprep.subr.mxu0 %v2649_v8 }
 0x638   :  { %v610_v34 = vpop.f32.mrf.mxu0 }
 0x639   :  { %v614_v35 = vadd.f32 %v610_v34, %v2803_v22 }
 0x63a   :  { %v2355_v36 = vpop.f32.mrf.mxu0 }
 0x63b   :  { %2537 = vtanh.f32 %v614_v35  ;;  %v2129_v38 = vmul.f32 -1.442695, %v614_v35 }
 0x63d   :  { %2539 = vpow2.f32 %v2129_v38 }
 0x648   :  { %v2538_v37 = vpop.eup %2537 }
 0x649   :  { %624 = vrot.lane.b32.xlu0 %v2538_v37, %s2651_s4 }
 0x64a   :  { %v2540_v39 = vpop.eup %2539 }
 0x64b   :  { %v618_v40 = vadd.f32 1.0, %v2540_v39 }
 0x64d   :  { %2541 = vrcp.f32 %v618_v40 }
 0x65a   :  { %v2542_v41 = vpop.eup %2541 }
 0x65b   :  { %v622_v44 = vmul.f32 %v2542_v41, %v531_v30 }
 0x6bb   :  { %v625_v42 = vpop.permute.xlu0 %624 }
 0x6bc   :  { %v627_v43 = vmul.f32 %v2542_v41, %v625_v42 }
 0x6be   :  { %629 = vrot.lane.b32.xlu1 %v627_v43, %s2652_s30 }
 0x730   :  { %v630_v45 = vpop.permute.xlu1 %629 }
 0x731   :  { %v632_v46 = vadd.f32 %v630_v45, %v622_v44  ;;  %v2969_v45 = vld [vmem:[%s3206_s6 + $0x10] sm:$0xff] }
 0x733   :  { %2543 = vtanh.f32 %v632_v46 }
 0x740   :  { %v2544_v22 = vpop.eup %2543 }
 0x741   :  { %635 = vrot.lane.b32.xlu0 %v2544_v22, %s2651_s4  ;;  %v2986_v22 = vld [vmem:[%s3206_s6] sm:$0xff] }
 0x7b3   :  { %v636_v47 = vpop.permute.xlu0 %635 }
 0x7b4   :  { %v638_v48 = vmul.f32 %v2542_v41, %v636_v47 }
 0x7b6   :  { %641 = vrot.lane.b32.xlu1 %v638_v48, %s2652_s30 }
 0x828   :  { %v642_v49 = vpop.permute.xlu1 %641 }
 0x829   :  { %2365 = vmatmul.mubr.msk.f32.vlgmr.msra.gmra.mxu1 %vm58_vm0, %v642_v49 }
 0x82a   :  { %2379 = vmatpush3.msra.mxu1 %v2740_v6  ;;  %2386 = vmatprep.mubr.msk.f32.mxu1 %vm2650_vm1, %v2649_v8 }
 0x82b   :  { %2380 = vmatprep.subr.mxu1 %v2649_v8 }
 0x82c   :  { %2381 = vmatpush3.msra.mxu1 %v2750_v9 }
 0x82d   :  { %2382 = vmatprep.subr.mxu1 %v2649_v8 }
 0x82e   :  { %2383 = vmatpush3.msra.mxu1 %v2764_v12 }
 0x82f   :  { %2384 = vmatprep.subr.mxu1 %v2649_v8 }
 0x830   :  { %2385 = vmatpush3.msra.mxu1 %v2772_v13 }
 0x831   :  { %2400 = vmatprep.subr.mxu1 %v2649_v8 }
 0x8e9   :  { %v711_v50 = vpop.f32.mrf.mxu1 }
 0x8ea   :  { %v715_v6 = vadd.f32 %v711_v50, %v2801_v20 }
 0x8eb   :  { %v2366_v51 = vpop.f32.mrf.mxu1 }
 0x8ec   :  { %2545 = vtanh.f32 %v715_v6  ;;  %v2131_v53 = vmul.f32 -1.442695, %v715_v6  ;;  %v288_v6 = vadd.f32 %v2874_v56, %v2879_v59 }
 0x8ee   :  { %2547 = vpow2.f32 %v2131_v53 }
 0x8f9   :  { %v2546_v52 = vpop.eup %2545 }
 0x8fa   :  { %725 = vrot.lane.b32.xlu0 %v2546_v52, %s2651_s4 }
 0x8fb   :  { %v2548_v9 = vpop.eup %2547 }
 0x8fc   :  { %v719_v54 = vadd.f32 1.0, %v2548_v9 }
 0x8fe   :  { %2549 = vrcp.f32 %v719_v54 }
 0x90b   :  { %v2550_v12 = vpop.eup %2549 }
 0x90c   :  { %v723_v13 = vmul.f32 %v2550_v12, %v632_v46  ;;  %v2977_v46 = vld [vmem:[%s3206_s6 + $0x8] sm:$0xff] }
 0x96c   :  { %v726_v55 = vpop.permute.xlu0 %725 }
 0x96d   :  { %v728_v57 = vmul.f32 %v2550_v12, %v726_v55 }
 0x96f   :  { %730 = vrot.lane.b32.xlu1 %v728_v57, %s2652_s30 }
 0x9e1   :  { %v731_v60 = vpop.permute.xlu1 %730 }
 0x9e2   :  { %v733_v62 = vadd.f32 %v731_v60, %v723_v13 }
 0x9e4   :  { %2551 = vtanh.f32 %v733_v62 }
 0x9f1   :  { %v2552_v20 = vpop.eup %2551 }
 0x9f2   :  { %736 = vrot.lane.b32.xlu0 %v2552_v20, %s2651_s4 }
 0xa64   :  { %v737_v0 = vpop.permute.xlu0 %736 }
 0xa65   :  { %v739_v2 = vmul.f32 %v2550_v12, %v737_v0 }
 0xa67   :  { %742 = vrot.lane.b32.xlu1 %v739_v2, %s2652_s30 }
 0xad9   :  { %v743_v4 = vpop.permute.xlu1 %742 }
 0xada   :  { %2376 = vmatmul.mubr.msk.f32.vlgmr.msra.gmra.mxu0 %vm58_vm0, %v743_v4 }
 0xadb   :  { %2397 = vmatprep.mubr.msk.f32.mxu0 %vm2650_vm1, %v2649_v8 }
 0xb9a   :  { %v812_v7 = vpop.f32.mrf.mxu0 }
 0xb9b   :  { %v816_v11 = vadd.f32 %v812_v7, %v2807_v27 }
 0xb9c   :  { %v2377_v14 = vpop.f32.mrf.mxu0 }
 0xb9d   :  { %2553 = vtanh.f32 %v816_v11  ;;  %v2133_v16 = vmul.f32 -1.442695, %v816_v11 }
 0xb9f   :  { %2555 = vpow2.f32 %v2133_v16 }
 0xbaa   :  { %v2554_v15 = vpop.eup %2553 }
 0xbab   :  { %826 = vrot.lane.b32.xlu0 %v2554_v15, %s2651_s4 }
 0xbac   :  { %v2556_v18 = vpop.eup %2555 }
 0xbad   :  { %v820_v19 = vadd.f32 1.0, %v2556_v18 }
 0xbaf   :  { %2557 = vrcp.f32 %v820_v19 }
 0xbbc   :  { %v2558_v21 = vpop.eup %2557 }
 0xbbd   :  { %v824_v26 = vmul.f32 %v2558_v21, %v733_v62 }
 0xc1d   :  { %v827_v23 = vpop.permute.xlu0 %826 }
 0xc1e   :  { %v829_v25 = vmul.f32 %v2558_v21, %v827_v23 }
 0xc20   :  { %831 = vrot.lane.b32.xlu1 %v829_v25, %s2652_s30 }
 0xc92   :  { %v832_v28 = vpop.permute.xlu1 %831 }
 0xc93   :  { %v834_v29 = vadd.f32 %v832_v28, %v824_v26 }
 0xc95   :  { %2559 = vtanh.f32 %v834_v29 }
 0xca2   :  { %v2560_v27 = vpop.eup %2559 }
 0xca3   :  { %837 = vrot.lane.b32.xlu0 %v2560_v27, %s2651_s4 }
 0xd15   :  { %v838_v30 = vpop.permute.xlu0 %837 }
 0xd16   :  { %v840_v17 = vmul.f32 %v2558_v21, %v838_v30 }
 0xd18   :  { %843 = vrot.lane.b32.xlu1 %v840_v17, %s2652_s30 }
 0xd8a   :  { %v844_v31 = vpop.permute.xlu1 %843 }
 0xd8b   :  { %2387 = vmatmul.mubr.msk.f32.vlgmr.msra.gmra.mxu1 %vm58_vm0, %v844_v31 }
 0xd8c   :  { %2408 = vmatprep.mubr.msk.f32.mxu1 %vm2650_vm1, %v2649_v8 }
 0xe4b   :  { %v913_v32 = vpop.f32.mrf.mxu1 }
 0xe4c   :  { %v917_v33 = vadd.f32 %v913_v32, %v2805_v24  ;;  %v2964_v24 = vld [vmem:[%s3206_s6 + $0x18] sm:$0xff] }
 0xe4d   :  { %v2388_v34 = vpop.f32.mrf.mxu1  ;;  %2390 = vmatpush3.msra.mxu0 %v2964_v24  ;;  %2401 = vmatpush3.msra.mxu1 %v2964_v24 }
 0xe4e   :  { %2561 = vtanh.f32 %v917_v33  ;;  %v2135_v36 = vmul.f32 -1.442695, %v917_v33  ;;  %2391 = vmatprep.subr.mxu0 %v2649_v8  ;;  %2402 = vmatprep.subr.mxu1 %v2649_v8 }
 0xe4f   :  { %2392 = vmatpush3.msra.mxu0 %v2969_v45  ;;  %2403 = vmatpush3.msra.mxu1 %v2969_v45 }
 0xe50   :  { %2563 = vpow2.f32 %v2135_v36  ;;  %2393 = vmatprep.subr.mxu0 %v2649_v8  ;;  %2404 = vmatprep.subr.mxu1 %v2649_v8 }
 0xe51   :  { %2394 = vmatpush3.msra.mxu0 %v2977_v46  ;;  %2405 = vmatpush3.msra.mxu1 %v2977_v46 }
 0xe52   :  { %2395 = vmatprep.subr.mxu0 %v2649_v8  ;;  %2406 = vmatprep.subr.mxu1 %v2649_v8 }
 0xe53   :  { %2396 = vmatpush3.msra.mxu0 %v2986_v22  ;;  %2407 = vmatpush3.msra.mxu1 %v2986_v22 }
 0xe54   :  { %2411 = vmatprep.subr.mxu0 %v2649_v8  ;;  %2422 = vmatprep.subr.mxu1 %v2649_v8 }
 0xe5b   :  { %v2562_v35 = vpop.eup %2561 }
 0xe5c   :  { %927 = vrot.lane.b32.xlu0 %v2562_v35, %s2651_s4 }
 0xe5d   :  { %v2564_v37 = vpop.eup %2563 }
 0xe5e   :  { %v921_v38 = vadd.f32 1.0, %v2564_v37 }
 0xe60   :  { %2565 = vrcp.f32 %v921_v38 }
 0xe6d   :  { %v2566_v39 = vpop.eup %2565 }
 0xe6e   :  { %v925_v42 = vmul.f32 %v2566_v39, %v834_v29 }
 0xece   :  { %v928_v40 = vpop.permute.xlu0 %927 }
 0xecf   :  { %v930_v41 = vmul.f32 %v2566_v39, %v928_v40 }
 0xed1   :  { %932 = vrot.lane.b32.xlu1 %v930_v41, %s2652_s30 }
 0xf43   :  { %v933_v43 = vpop.permute.xlu1 %932 }
 0xf44   :  { %v935_v44 = vadd.f32 %v933_v43, %v925_v42 }
 0xf46   :  { %2567 = vtanh.f32 %v935_v44 }
 0xf53   :  { %v2568_v47 = vpop.eup %2567 }
 0xf54   :  { %938 = vrot.lane.b32.xlu0 %v2568_v47, %s2651_s4 }
 0xfc6   :  { %v939_v48 = vpop.permute.xlu0 %938 }
 0xfc7   :  { %v941_v49 = vmul.f32 %v2566_v39, %v939_v48 }
 0xfc9   :  { %948 = vrot.lane.b32.xlu1 %v941_v49, %s2652_s30 }
0x103b   :  { %v949_v50 = vpop.permute.xlu1 %948 }
0x103c   :  { %2398 = vmatmul.mubr.msk.f32.vlgmr.msra.gmra.mxu0 %vm58_vm0, %v949_v50 }
0x103d   :  { %2412 = vmatpush3.msra.mxu0 %v2964_v24  ;;  %2419 = vmatprep.mubr.msk.f32.mxu0 %vm2650_vm1, %v2649_v8 }
0x103e   :  { %2413 = vmatprep.subr.mxu0 %v2649_v8 }
0x103f   :  { %2414 = vmatpush3.msra.mxu0 %v2969_v45 }
0x1040   :  { %2415 = vmatprep.subr.mxu0 %v2649_v8 }
0x1041   :  { %2416 = vmatpush3.msra.mxu0 %v2977_v46 }
0x1042   :  { %2417 = vmatprep.subr.mxu0 %v2649_v8 }
0x1043   :  { %2418 = vmatpush3.msra.mxu0 %v2986_v22 }
0x1044   :  { %2433 = vmatprep.subr.mxu0 %v2649_v8 }
0x10fc   :  { %v1018_v51 = vpop.f32.mrf.mxu0 }
0x10fd   :  { %v1022_v52 = vadd.f32 %v1018_v51, %v288_v6 }
0x10fe   :  { %v2399_v53 = vpop.f32.mrf.mxu0 }
0x10ff   :  { %2569 = vtanh.f32 %v1022_v52  ;;  %v2137_v54 = vmul.f32 -1.442695, %v1022_v52 }
0x1101   :  { %2571 = vpow2.f32 %v2137_v54 }
0x110c   :  { %v2570_v9 = vpop.eup %2569 }
0x110d   :  { %1032 = vrot.lane.b32.xlu0 %v2570_v9, %s2651_s4 }
0x110e   :  { %v2572_v12 = vpop.eup %2571 }
0x110f   :  { %v1026_v55 = vadd.f32 1.0, %v2572_v12 }
0x1111   :  { %2573 = vrcp.f32 %v1026_v55 }
0x111e   :  { %v2574_v57 = vpop.eup %2573 }
0x111f   :  { %v1030_v62 = vmul.f32 %v2574_v57, %v935_v44 }
0x117f   :  { %v1033_v13 = vpop.permute.xlu0 %1032 }
0x1180   :  { %v1035_v60 = vmul.f32 %v2574_v57, %v1033_v13 }
0x1182   :  { %1037 = vrot.lane.b32.xlu1 %v1035_v60, %s2652_s30 }
0x11f4   :  { %v1038_v20 = vpop.permute.xlu1 %1037 }
0x11f5   :  { %v1040_v59 = vadd.f32 %v1038_v20, %v1030_v62 }
0x11f7   :  { %2575 = vtanh.f32 %v1040_v59 }
0x1204   :  { %v2576_v0 = vpop.eup %2575 }
0x1205   :  { %1043 = vrot.lane.b32.xlu0 %v2576_v0, %s2651_s4 }
0x1277   :  { %v1044_v2 = vpop.permute.xlu0 %1043 }
0x1278   :  { %v1046_v4 = vmul.f32 %v2574_v57, %v1044_v2 }
0x127a   :  { %1048 = vrot.lane.b32.xlu1 %v1046_v4, %s2652_s30 }
0x12ec   :  { %v1049_v7 = vpop.permute.xlu1 %1048 }
0x12ed   :  { %1051 = vst.msk [vmem:[#allocation4] sm:$0xff] %vm58_vm0, %v1049_v7  ;;  %2409 = vmatmul.mubr.msk.f32.vlgmr.msra.gmra.mxu1 %vm58_vm0, %v1049_v7 }
0x12ee   :  { %2423 = vmatpush3.msra.mxu1 %v2964_v24  ;;  %2430 = vmatprep.mubr.msk.f32.mxu1 %vm2650_vm1, %v2649_v8 }
0x12ef   :  { %2424 = vmatprep.subr.mxu1 %v2649_v8 }
0x12f0   :  { %2425 = vmatpush3.msra.mxu1 %v2969_v45 }
0x12f1   :  { %2426 = vmatprep.subr.mxu1 %v2649_v8 }
0x12f2   :  { %2427 = vmatpush3.msra.mxu1 %v2977_v46 }
0x12f3   :  { %2428 = vmatprep.subr.mxu1 %v2649_v8 }
0x12f4   :  { %2429 = vmatpush3.msra.mxu1 %v2986_v22 }
0x12f5   :  { %2444 = vmatprep.subr.mxu1 %v2649_v8 }
0x13ad   :  { %v1125_v11 = vpop.f32.mrf.mxu1 }
0x13ae   :  { %v1129_v14 = vadd.f32 %v1125_v11, %v2877_v58 }
0x13af   :  { %v2410_v15 = vpop.f32.mrf.mxu1 }
0x13b0   :  { %2577 = vtanh.f32 %v1129_v14  ;;  %v2139_v18 = vmul.f32 -1.442695, %v1129_v14 }
0x13b2   :  { %2579 = vpow2.f32 %v2139_v18 }
0x13bd   :  { %v2578_v16 = vpop.eup %2577 }
0x13be   :  { %1139 = vrot.lane.b32.xlu0 %v2578_v16, %s2651_s4 }
0x13bf   :  { %v2580_v19 = vpop.eup %2579 }
0x13c0   :  { %v1133_v21 = vadd.f32 1.0, %v2580_v19 }
0x13c2   :  { %2581 = vrcp.f32 %v1133_v21 }
0x13cf   :  { %v2582_v23 = vpop.eup %2581 }
0x13d0   :  { %v1137_v28 = vmul.f32 %v2582_v23, %v1040_v59 }
0x1430   :  { %v1140_v25 = vpop.permute.xlu0 %1139 }
0x1431   :  { %v1142_v26 = vmul.f32 %v2582_v23, %v1140_v25 }
0x1433   :  { %1144 = vrot.lane.b32.xlu1 %v1142_v26, %s2652_s30 }
0x14a5   :  { %v1145_v29 = vpop.permute.xlu1 %1144 }
0x14a6   :  { %v1147_v27 = vadd.f32 %v1145_v29, %v1137_v28 }
0x14a8   :  { %2583 = vtanh.f32 %v1147_v27 }
0x14b5   :  { %v2584_v58 = vpop.eup %2583 }
0x14b6   :  { %1150 = vrot.lane.b32.xlu0 %v2584_v58, %s2651_s4 }
0x1528   :  { %v1151_v30 = vpop.permute.xlu0 %1150 }
0x1529   :  { %v1153_v17 = vmul.f32 %v2582_v23, %v1151_v30 }
0x152b   :  { %1155 = vrot.lane.b32.xlu1 %v1153_v17, %s2652_s30 }
0x159d   :  { %v1156_v31 = vpop.permute.xlu1 %1155 }
0x159e   :  { %1158 = vst.msk [vmem:[#allocation4 + $0x8] sm:$0xff] %vm58_vm0, %v1156_v31  ;;  %2420 = vmatmul.mubr.msk.f32.vlgmr.msra.gmra.mxu0 %vm58_vm0, %v1156_v31 }
0x159f   :  { %2434 = vmatpush3.msra.mxu0 %v2964_v24  ;;  %2441 = vmatprep.mubr.msk.f32.mxu0 %vm2650_vm1, %v2649_v8 }
0x15a0   :  { %2435 = vmatprep.subr.mxu0 %v2649_v8 }
0x15a1   :  { %2436 = vmatpush3.msra.mxu0 %v2969_v45 }
0x15a2   :  { %2437 = vmatprep.subr.mxu0 %v2649_v8 }
0x15a3   :  { %2438 = vmatpush3.msra.mxu0 %v2977_v46 }
0x15a4   :  { %2439 = vmatprep.subr.mxu0 %v2649_v8 }
0x15a5   :  { %2440 = vmatpush3.msra.mxu0 %v2986_v22 }
0x15a6   :  { %2455 = vmatprep.subr.mxu0 %v2649_v8 }
0x165e   :  { %v1232_v32 = vpop.f32.mrf.mxu0 }
0x165f   :  { %v1236_v33 = vadd.f32 %v1232_v32, %v2885_v63 }
0x1660   :  { %v2421_v34 = vpop.f32.mrf.mxu0 }
0x1661   :  { %2585 = vtanh.f32 %v1236_v33  ;;  %v2141_v36 = vmul.f32 -1.442695, %v1236_v33 }
0x1663   :  { %2587 = vpow2.f32 %v2141_v36 }
0x166e   :  { %v2586_v35 = vpop.eup %2585 }
0x166f   :  { %1246 = vrot.lane.b32.xlu0 %v2586_v35, %s2651_s4 }
0x1670   :  { %v2588_v37 = vpop.eup %2587 }
0x1671   :  { %v1240_v38 = vadd.f32 1.0, %v2588_v37 }
0x1673   :  { %2589 = vrcp.f32 %v1240_v38 }
0x1680   :  { %v2590_v39 = vpop.eup %2589 }
0x1681   :  { %v1244_v42 = vmul.f32 %v2590_v39, %v1147_v27 }
0x16e1   :  { %v1247_v40 = vpop.permute.xlu0 %1246 }
0x16e2   :  { %v1249_v41 = vmul.f32 %v2590_v39, %v1247_v40  ;;  %v1811_v40 = vld [vmem:[%s3207_s8 + $0x10] sm:$0xff] }
0x16e4   :  { %1251 = vrot.lane.b32.xlu1 %v1249_v41, %s2652_s30  ;;  %v1801_v41 = vld [vmem:[#allocation4] sm:$0xff] }
0x1756   :  { %v1252_v43 = vpop.permute.xlu1 %1251 }
0x1757   :  { %v1254_v44 = vadd.f32 %v1252_v43, %v1244_v42  ;;  %v1810_v42 = vld [vmem:[%s3207_s8 + $0x8] sm:$0xff]  ;;  %v1809_v43 = vld [vmem:[%s3207_s8] sm:$0xff] }
0x1759   :  { %2591 = vtanh.f32 %v1254_v44 }
0x1766   :  { %v2592_v63 = vpop.eup %2591 }
0x1767   :  { %1257 = vrot.lane.b32.xlu0 %v2592_v63, %s2651_s4 }
0x17d9   :  { %v1258_v47 = vpop.permute.xlu0 %1257 }
0x17da   :  { %v1260_v48 = vmul.f32 %v2590_v39, %v1258_v47 }
0x17dc   :  { %1262 = vrot.lane.b32.xlu1 %v1260_v48, %s2652_s30 }
0x184e   :  { %v1263_v49 = vpop.permute.xlu1 %1262 }
0x184f   :  { %1265 = vst.msk [vmem:[#allocation4 + $0x10] sm:$0xff] %vm58_vm0, %v1263_v49  ;;  %2431 = vmatmul.mubr.msk.f32.vlgmr.msra.gmra.mxu1 %vm58_vm0, %v1263_v49 }
0x1850   :  { %2445 = vmatpush3.msra.mxu1 %v2964_v24  ;;  %2452 = vmatprep.mubr.msk.f32.mxu1 %vm2650_vm1, %v2649_v8 }
0x1851   :  { %2446 = vmatprep.subr.mxu1 %v2649_v8 }
0x1852   :  { %2447 = vmatpush3.msra.mxu1 %v2969_v45 }
0x1853   :  { %2448 = vmatprep.subr.mxu1 %v2649_v8 }
0x1854   :  { %2449 = vmatpush3.msra.mxu1 %v2977_v46 }
0x1855   :  { %2450 = vmatprep.subr.mxu1 %v2649_v8 }
0x1856   :  { %2451 = vmatpush3.msra.mxu1 %v2986_v22  ;;  %v1803_v63 = vld [vmem:[#allocation4 + $0x10] sm:$0xff] }
0x1857   :  { %2466 = vmatprep.subr.mxu1 %v2649_v8 }
0x190f   :  { %v1339_v50 = vpop.f32.mrf.mxu1 }
0x1910   :  { %v1343_v6 = vadd.f32 %v1339_v50, %v2882_v61  ;;  %v318_v50 = vadd.f32 %v2874_v56, %v2907_v10  ;;  %v1960_v10 = vld [vmem:[%s3208_s10 + $0x18] sm:$0xff] }
0x1911   :  { %v2432_v51 = vpop.f32.mrf.mxu1 }
0x1912   :  { %2593 = vtanh.f32 %v1343_v6  ;;  %v2143_v53 = vmul.f32 -1.442695, %v1343_v6 }
0x1914   :  { %2595 = vpow2.f32 %v2143_v53 }
0x191f   :  { %v2594_v52 = vpop.eup %2593 }
0x1920   :  { %1353 = vrot.lane.b32.xlu0 %v2594_v52, %s2651_s4 }
0x1921   :  { %v2596_v9 = vpop.eup %2595 }
0x1922   :  { %v1347_v54 = vadd.f32 1.0, %v2596_v9 }
0x1924   :  { %2597 = vrcp.f32 %v1347_v54 }
0x1931   :  { %v2598_v12 = vpop.eup %2597 }
0x1932   :  { %v1351_v13 = vmul.f32 %v2598_v12, %v1254_v44  ;;  %v1802_v44 = vld [vmem:[#allocation4 + $0x8] sm:$0xff] }
0x1992   :  { %v1354_v55 = vpop.permute.xlu0 %1353 }
0x1993   :  { %v1356_v57 = vmul.f32 %v2598_v12, %v1354_v55 }
0x1995   :  { %1358 = vrot.lane.b32.xlu1 %v1356_v57, %s2652_s30 }
0x1a07   :  { %v1359_v60 = vpop.permute.xlu1 %1358 }
0x1a08   :  { %v1361_v62 = vadd.f32 %v1359_v60, %v1351_v13 }
0x1a0a   :  { %2599 = vtanh.f32 %v1361_v62 }
0x1a17   :  { %v2600_v61 = vpop.eup %2599 }
0x1a18   :  { %1364 = vrot.lane.b32.xlu0 %v2600_v61, %s2651_s4 }
0x1a8a   :  { %v1365_v20 = vpop.permute.xlu0 %1364 }
0x1a8b   :  { %v1367_v59 = vmul.f32 %v2598_v12, %v1365_v20 }
0x1a8d   :  { %1369 = vrot.lane.b32.xlu1 %v1367_v59, %s2652_s30 }
0x1aff   :  { %v1370_v0 = vpop.permute.xlu1 %1369 }
0x1b00   :  { %1372 = vst.msk [vmem:[#allocation4 + $0x18] sm:$0xff] %vm58_vm0, %v1370_v0  ;;  %2442 = vmatmul.mubr.msk.f32.vlgmr.msra.gmra.mxu0 %vm58_vm0, %v1370_v0 }
0x1b01   :  { %2456 = vmatpush3.msra.mxu0 %v2964_v24  ;;  %2463 = vmatprep.mubr.msk.f32.mxu0 %vm2650_vm1, %v2649_v8 }
0x1b02   :  { %2457 = vmatprep.subr.mxu0 %v2649_v8 }
0x1b03   :  { %2458 = vmatpush3.msra.mxu0 %v2969_v45 }
0x1b04   :  { %2459 = vmatprep.subr.mxu0 %v2649_v8 }
0x1b05   :  { %2460 = vmatpush3.msra.mxu0 %v2977_v46 }
0x1b06   :  { %2461 = vmatprep.subr.mxu0 %v2649_v8 }
0x1b07   :  { %2462 = vmatpush3.msra.mxu0 %v2986_v22  ;;  %v1804_v47 = vld [vmem:[#allocation4 + $0x18] sm:$0xff] }
0x1bc0   :  { %v1446_v2 = vpop.f32.mrf.mxu0 }
0x1bc1   :  { %v1450_v4 = vadd.f32 %v1446_v2, %v2891_v3 }
0x1bc2   :  { %v2443_v7 = vpop.f32.mrf.mxu0 }
0x1bc3   :  { %2601 = vtanh.f32 %v1450_v4  ;;  %v2145_v14 = vmul.f32 -1.442695, %v1450_v4  ;;  %v3134_v7 = vld [vmem:[%s3209_s9] ss:$0 sm:$0xff] }
0x1bc5   :  { %2603 = vpow2.f32 %v2145_v14 }
0x1bd0   :  { %v2602_v11 = vpop.eup %2601 }
0x1bd1   :  { %1460 = vrot.lane.b32.xlu0 %v2602_v11, %s2651_s4 }
0x1bd2   :  { %v2604_v15 = vpop.eup %2603 }
0x1bd3   :  { %v1454_v16 = vadd.f32 1.0, %v2604_v15 }
0x1bd5   :  { %2605 = vrcp.f32 %v1454_v16 }
0x1be2   :  { %v2606_v18 = vpop.eup %2605 }
0x1be3   :  { %v1458_v23 = vmul.f32 %v2606_v18, %v1361_v62 }
0x1c43   :  { %v1461_v19 = vpop.permute.xlu0 %1460 }
0x1c44   :  { %v1463_v21 = vmul.f32 %v2606_v18, %v1461_v19 }
0x1c46   :  { %1465 = vrot.lane.b32.xlu1 %v1463_v21, %s2652_s30 }
0x1cb8   :  { %v1466_v25 = vpop.permute.xlu1 %1465 }
0x1cb9   :  { %v1468_v26 = vadd.f32 %v1466_v25, %v1458_v23 }
0x1cbb   :  { %2607 = vtanh.f32 %v1468_v26 }
0x1cc8   :  { %v2608_v3 = vpop.eup %2607 }
0x1cc9   :  { %1471 = vrot.lane.b32.xlu0 %v2608_v3, %s2651_s4  ;;  %v1959_v3 = vld [vmem:[%s3208_s10 + $0x10] sm:$0xff] }
0x1d3b   :  { %v1472_v28 = vpop.permute.xlu0 %1471 }
0x1d3c   :  { %v1474_v29 = vmul.f32 %v2606_v18, %v1472_v28 }
0x1d3e   :  { %1476 = vrot.lane.b32.xlu1 %v1474_v29, %s2652_s30  ;;  %v1958_v29 = vld [vmem:[%s3208_s10 + $0x8] sm:$0xff] }
0x1db0   :  { %v1477_v27 = vpop.permute.xlu1 %1476 }
0x1db1   :  { %1479 = vst.msk [vmem:[#allocation4 + $0x20] sm:$0xff] %vm58_vm0, %v1477_v27  ;;  %2453 = vmatmul.mubr.msk.f32.vlgmr.msra.gmra.mxu1 %vm58_vm0, %v1477_v27  ;;  %v1957_v27 = vld [vmem:[%s3208_s10] sm:$0xff] }
0x1db2   :  { %2467 = vmatpush3.msra.mxu1 %v2964_v24  ;;  %2474 = vmatprep.mubr.msk.f32.mxu1 %vm2650_vm1, %v2649_v8 }
0x1db3   :  { %2468 = vmatprep.subr.mxu1 %v2649_v8 }
0x1db4   :  { %2469 = vmatpush3.msra.mxu1 %v2969_v45 }
0x1db5   :  { %2470 = vmatprep.subr.mxu1 %v2649_v8 }
0x1db6   :  { %2471 = vmatpush3.msra.mxu1 %v2977_v46 }
0x1db7   :  { %2472 = vmatprep.subr.mxu1 %v2649_v8 }
0x1db8   :  { %2473 = vmatpush3.msra.mxu1 %v2986_v22  ;;  %v1805_v48 = vld [vmem:[#allocation4 + $0x20] sm:$0xff] }
0x1db9   :  { %2497 = vmatprep.subr.mxu1 %v1960_v10 }
0x1e71   :  { %v1553_v58 = vpop.f32.mrf.mxu1 }
0x1e72   :  { %v1557_v30 = vadd.f32 %v1553_v58, %v2888_v1  ;;  %v1812_v1 = vld [vmem:[%s3207_s8 + $0x18] sm:$0xff] }
0x1e73   :  { %v2454_v17 = vpop.f32.mrf.mxu1  ;;  %2477 = vmatprep.subr.mxu0 %v1812_v1 }
0x1e74   :  { %2609 = vtanh.f32 %v1557_v30  ;;  %v2147_v31 = vmul.f32 -1.442695, %v1557_v30 }
0x1e76   :  { %2611 = vpow2.f32 %v2147_v31 }
0x1e81   :  { %v2610_v24 = vpop.eup %2609 }
0x1e82   :  { %1567 = vrot.lane.b32.xlu0 %v2610_v24, %s2651_s4 }
0x1e83   :  { %v2612_v32 = vpop.eup %2611 }
0x1e84   :  { %v1561_v45 = vadd.f32 1.0, %v2612_v32 }
0x1e86   :  { %2613 = vrcp.f32 %v1561_v45 }
0x1e93   :  { %v2614_v33 = vpop.eup %2613 }
0x1e94   :  { %v1565_v8 = vmul.f32 %v2614_v33, %v1468_v26 }
0x1ef4   :  { %v1568_v34 = vpop.permute.xlu0 %1567 }
0x1ef5   :  { %v1570_v46 = vmul.f32 %v2614_v33, %v1568_v34 }
0x1ef7   :  { %1572 = vrot.lane.b32.xlu1 %v1570_v46, %s2652_s30  ;;  %v2161_v46 = vld [vmem:[%s3210_s11] ss:$0 sm:$0xff] }
0x1f69   :  { %v1573_v22 = vpop.permute.xlu1 %1572 }
0x1f6a   :  { %v1575_v35 = vadd.f32 %v1573_v22, %v1565_v8 }
0x1f6c   :  { %2615 = vtanh.f32 %v1575_v35 }
0x1f79   :  { %v2616_v36 = vpop.eup %2615 }
0x1f7a   :  { %1578 = vrot.lane.b32.xlu0 %v2616_v36, %s2651_s4 }
0x1fec   :  { %v1579_v37 = vpop.permute.xlu0 %1578 }
0x1fed   :  { %v1581_v38 = vmul.f32 %v2614_v33, %v1579_v37 }
0x1fef   :  { %1583 = vrot.lane.b32.xlu1 %v1581_v38, %s2652_s30 }
0x2061   :  { %v1584_v39 = vpop.permute.xlu1 %1583 }
0x2062   :  { %1586 = vst.msk [vmem:[#allocation4 + $0x28] sm:$0xff] %vm58_vm0, %v1584_v39  ;;  %2464 = vmatmul.mubr.msk.f32.vlgmr.msra.gmra.mxu0 %vm58_vm0, %v1584_v39 }
0x2063   :  { %2478 = vmatpush3.msra.mxu0 %v1812_v1  ;;  %2485 = vmatprep.mubr.msk.f32.mxu0 %vm58_vm0, %v1801_v41 }
0x2064   :  { %2479 = vmatprep.subr.mxu0 %v1811_v40 }
0x2065   :  { %2480 = vmatpush3.msra.mxu0 %v1811_v40 }
0x2066   :  { %2481 = vmatprep.subr.mxu0 %v1810_v42 }
0x2067   :  { %2482 = vmatpush3.msra.mxu0 %v1810_v42 }
0x2068   :  { %2483 = vmatprep.subr.mxu0 %v1809_v43 }
0x2069   :  { %2484 = vmatpush3.msra.mxu0 %v1809_v43  ;;  %v1806_v49 = vld [vmem:[#allocation4 + $0x28] sm:$0xff] }
0x206a   :  { %2486 = vmatmul.mubr.msk.f32.vlgmr.msra.gmra.mxu0 %vm58_vm0, %v1802_v44 }
0x206b   :  { %2488 = vmatprep.mubr.msk.f32.mxu0 %vm58_vm0, %v1803_v63 }
0x206e   :  { %2489 = vmatmul.mubr.msk.f32.gmra.mxu0 %vm58_vm0, %v1804_v47 }
0x206f   :  { %2491 = vmatprep.mubr.msk.f32.mxu0 %vm58_vm0, %v1805_v48 }
0x2072   :  { %2492 = vmatmul.mubr.msk.f32.gmra.mxu0 %vm58_vm0, %v1806_v49 }
0x2122   :  { %v1660_v6 = vpop.f32.mrf.mxu0 }
0x2123   :  { %v1664_v51 = vadd.f32 %v1660_v6, %v318_v50 }
0x2124   :  { %v2465_v52 = vpop.f32.mrf.mxu0 }
0x2125   :  { %2617 = vtanh.f32 %v1664_v51  ;;  %v2149_v9 = vmul.f32 -1.442695, %v1664_v51 }
0x2127   :  { %2619 = vpow2.f32 %v2149_v9 }
0x212a   :  { %v2487_v0 = vpop.f32.mrf.mxu0 }
0x212b   :  { %v1916_v16 = vadd.f32 %v2487_v0, %v3134_v7 }
0x212c   :  { %v1910_v2 = vpop.f32.mrf.mxu0 }
0x212d   :  { %v1911_v11 = vadd.f32 %v3134_v7, %v1910_v2 }
0x212e   :  { %v2490_v4 = vpop.f32.mrf.mxu0 }
0x212f   :  { %v1926_v21 = vadd.f32 %v2490_v4, %v3134_v7 }
0x2130   :  { %v1920_v14 = vpop.f32.mrf.mxu0 }
0x2131   :  { %v1921_v18 = vadd.f32 %v3134_v7, %v1920_v14 }
0x2132   :  { %v2618_v53 = vpop.eup %2617  ;;  %v2493_v15 = vpop.f32.mrf.mxu0 }
0x2133   :  { %1674 = vrot.lane.b32.xlu0 %v2618_v53, %s2651_s4  ;;  %v1936_v25 = vadd.f32 %v2493_v15, %v3134_v7 }
0x2134   :  { %v2620_v54 = vpop.eup %2619  ;;  %v1930_v19 = vpop.f32.mrf.mxu0 }
0x2135   :  { %v1668_v12 = vadd.f32 1.0, %v2620_v54  ;;  %v1931_v23 = vadd.f32 %v3134_v7, %v1930_v19 }
0x2137   :  { %2621 = vrcp.f32 %v1668_v12 }
0x2144   :  { %v2622_v55 = vpop.eup %2621 }
0x2145   :  { %v1672_v60 = vmul.f32 %v2622_v55, %v1575_v35 }
0x21a5   :  { %v1675_v57 = vpop.permute.xlu0 %1674 }
0x21a6   :  { %v1677_v13 = vmul.f32 %v2622_v55, %v1675_v57 }
0x21a8   :  { %1679 = vrot.lane.b32.xlu1 %v1677_v13, %s2652_s30 }
0x221a   :  { %v1680_v62 = vpop.permute.xlu1 %1679 }
0x221b   :  { %v3123_v56 = vadd.f32 %v1680_v62, %v1672_v60 }
0x221d   :  { %2623 = vtanh.f32 %v3123_v56 }
0x221e   :  { %2625 = vtanh.f32 %v1911_v11 }
0x221f   :  { %2627 = vtanh.f32 %v1916_v16 }
0x2220   :  { %2629 = vtanh.f32 %v1921_v18 }
0x2221   :  { %2631 = vtanh.f32 %v1926_v21 }
0x2222   :  { %2633 = vtanh.f32 %v1931_v23 }
0x2223   :  { %2635 = vtanh.f32 %v1936_v25 }
0x222a   :  { %v2624_v61 = vpop.eup %2623 }
0x222b   :  { %1685 = vrot.lane.b32.xlu0 %v2624_v61, %s2651_s4  ;;  %v2626_v28 = vpop.eup %2625 }
0x222c   :  { %v2628_v58 = vpop.eup %2627 }
0x222d   :  { %v2630_v17 = vpop.eup %2629 }
0x222e   :  { %v2632_v24 = vpop.eup %2631 }
0x222f   :  { %v2634_v31 = vpop.eup %2633 }
0x2230   :  { %v2636_v32 = vpop.eup %2635 }
0x229d   :  { %v1686_v20 = vpop.permute.xlu0 %1685 }
0x229e   :  { %v1688_v59 = vmul.f32 %v2622_v55, %v1686_v20 }
0x22a0   :  { %1690 = vrot.lane.b32.xlu1 %v1688_v59, %s2652_s30 }
0x2312   :  { %v1691_v26 = vpop.permute.xlu1 %1690 }
0x2313   :  { %1693 = vst.msk [vmem:[#allocation4 + $0x30] sm:$0xff] %vm58_vm0, %v1691_v26  ;;  %2475 = vmatmul.mubr.msk.f32.vlgmr.msra.gmra.mxu1 %vm58_vm0, %v1691_v26 }
0x2314   :  { %2498 = vmatpush3.msra.mxu1 %v1960_v10  ;;  %2505 = vmatprep.mubr.msk.f32.mxu1 %vm58_vm0, %v2626_v28 }
0x2315   :  { %2499 = vmatprep.subr.mxu1 %v1959_v3 }
0x2316   :  { %2500 = vmatpush3.msra.mxu1 %v1959_v3 }
0x2317   :  { %2501 = vmatprep.subr.mxu1 %v1958_v29 }
0x2318   :  { %2502 = vmatpush3.msra.mxu1 %v1958_v29 }
0x2319   :  { %2503 = vmatprep.subr.mxu1 %v1957_v27 }
0x231a   :  { %2504 = vmatpush3.msra.mxu1 %v1957_v27  ;;  %v1807_v30 = vld [vmem:[#allocation4 + $0x30] sm:$0xff] }
0x231b   :  { %2506 = vmatmul.mubr.msk.f32.vlgmr.msra.gmra.mxu1 %vm58_vm0, %v2628_v58  ;;  %2494 = vmatprep.mubr.msk.f32.mxu0 %vm58_vm0, %v1807_v30 }
0x231c   :  { %2508 = vmatprep.mubr.msk.f32.mxu1 %vm58_vm0, %v2630_v17 }
0x231f   :  { %2509 = vmatmul.mubr.msk.f32.gmra.mxu1 %vm58_vm0, %v2632_v24 }
0x2320   :  { %2511 = vmatprep.mubr.msk.f32.mxu1 %vm58_vm0, %v2634_v31 }
0x2323   :  { %2512 = vmatmul.mubr.msk.f32.gmra.mxu1 %vm58_vm0, %v2636_v32 }
0x23d3   :  { %v1767_v45 = vpop.f32.mrf.mxu1 }
0x23d4   :  { %v1771_v33 = vadd.f32 %v1767_v45, %v2894_v5 }
0x23d5   :  { %v2476_v34 = vpop.f32.mrf.mxu1 }
0x23d6   :  { %2637 = vtanh.f32 %v1771_v33  ;;  %v2151_v44 = vmul.f32 -1.442695, %v1771_v33 }
0x23d8   :  { %2639 = vpow2.f32 %v2151_v44 }
0x23db   :  { %v2507_v8 = vpop.f32.mrf.mxu1 }
0x23dc   :  { %v2064_v22 = vadd.f32 %v2507_v8, %v2161_v46 }
0x23dd   :  { %v2058_v35 = vpop.f32.mrf.mxu1 }
0x23de   :  { %2098 = vst [vmem:[%s3211_s12 + $0x8] sm:$0xff] %v2064_v22  ;;  %v2059_v1 = vadd.f32 %v2161_v46, %v2058_v35 }
0x23df   :  { %v2510_v36 = vpop.f32.mrf.mxu1 }
0x23e0   :  { %2097 = vst [vmem:[%s3211_s12] sm:$0xff] %v2059_v1  ;;  %v2074_v5 = vadd.f32 %v2510_v36, %v2161_v46 }
0x23e1   :  { %v2068_v37 = vpop.f32.mrf.mxu1 }
0x23e2   :  { %2100 = vst [vmem:[%s3211_s12 + $0x18] sm:$0xff] %v2074_v5  ;;  %v2069_v38 = vadd.f32 %v2161_v46, %v2068_v37 }
0x23e3   :  { %v2638_v39 = vpop.eup %2637  ;;  %v2513_v40 = vpop.f32.mrf.mxu1 }
0x23e4   :  { %2099 = vst [vmem:[%s3211_s12 + $0x10] sm:$0xff] %v2069_v38  ;;  %v2084_v41 = vadd.f32 %v2513_v40, %v2161_v46  ;;  %1781 = vrot.lane.b32.xlu0 %v2638_v39, %s2651_s4 }
0x23e5   :  { %v2078_v42 = vpop.f32.mrf.mxu1  ;;  %v2640_v63 = vpop.eup %2639 }
0x23e6   :  { %2102 = vst [vmem:[%s3211_s12 + $0x28] sm:$0xff] %v2084_v41  ;;  %v2079_v43 = vadd.f32 %v2161_v46, %v2078_v42  ;;  %v1775_v47 = vadd.f32 1.0, %v2640_v63 }
0x23e8   :  { %2101 = vst [vmem:[%s3211_s12 + $0x20] sm:$0xff] %v2079_v43  ;;  %2641 = vrcp.f32 %v1775_v47 }
0x23f5   :  { %v2642_v48 = vpop.eup %2641 }
0x23f6   :  { %v1779_v6 = vmul.f32 %v2642_v48, %v3123_v56 }
0x2456   :  { %v1782_v49 = vpop.permute.xlu0 %1781 }
0x2457   :  { %v1784_v50 = vmul.f32 %v2642_v48, %v1782_v49 }
0x2459   :  { %1786 = vrot.lane.b32.xlu1 %v1784_v50, %s2652_s30 }
0x24cb   :  { %v1787_v51 = vpop.permute.xlu1 %1786 }
0x24cc   :  { %v1789_v52 = vadd.f32 %v1787_v51, %v1779_v6 }
0x24ce   :  { %2643 = vtanh.f32 %v1789_v52 }
0x24db   :  { %v2644_v53 = vpop.eup %2643 }
0x24dc   :  { %1792 = vrot.lane.b32.xlu0 %v2644_v53, %s2651_s4 }
0x254e   :  { %v1793_v9 = vpop.permute.xlu0 %1792 }
0x254f   :  { %v1795_v54 = vmul.f32 %v2642_v48, %v1793_v9 }
0x2551   :  { %1797 = vrot.lane.b32.xlu1 %v1795_v54, %s2652_s30 }
0x25c3   :  { %v1798_v12 = vpop.permute.xlu1 %1797 }
0x25c4   :  { %1800 = vst.msk [vmem:[#allocation4 + $0x38] sm:$0xff] %vm58_vm0, %v1798_v12 }
0x25cb   :  { %v1808_v55 = vld [vmem:[#allocation4 + $0x38] sm:$0xff] }
0x25cc   :  { %2495 = vmatmul.mubr.msk.f32.gmra.mxu0 %vm58_vm0, %v1808_v55 }
0x268c   :  { %v2496_v57 = vpop.f32.mrf.mxu0 }
0x268d   :  { %v1946_v13 = vadd.f32 %v2496_v57, %v3134_v7 }
0x268e   :  { %v1940_v60 = vpop.f32.mrf.mxu0 }
0x268f   :  { %v1941_v62 = vadd.f32 %v3134_v7, %v1940_v60 }
0x2691   :  { %2645 = vtanh.f32 %v1941_v62 }
0x2692   :  { %2647 = vtanh.f32 %v1946_v13 }
0x269e   :  { %v2646_v56 = vpop.eup %2645 }
0x269f   :  { %v2648_v10 = vpop.eup %2647  ;;  %2514 = vmatprep.mubr.msk.f32.mxu1 %vm58_vm0, %v2646_v56 }
0x26a0   :  { %2515 = vmatmul.mubr.msk.f32.gmra.mxu1 %vm58_vm0, %v2648_v10 }
0x2760   :  { %v2516_v61 = vpop.f32.mrf.mxu1 }
0x2761   :  { %v2094_v20 = vadd.f32 %v2516_v61, %v2161_v46 }
0x2762   :  { %v2088_v59 = vpop.f32.mrf.mxu1 }
0x2763   :  { %2104 = vst [vmem:[%s3211_s12 + $0x38] sm:$0xff] %v2094_v20  ;;  %v2089_v0 = vadd.f32 %v2161_v46, %v2088_v59 }
0x2765   :  { %2103 = vst [vmem:[%s3211_s12 + $0x30] sm:$0xff] %v2089_v0 }

</bundles_post_ra>
